<compile_context>
chip_gen: v7x
topology: tpu7x:2x2x1
jax: 0.10.0
libtpu: 0.0.40
codegen_flags: <defaults>
</compile_context>

<pallas_src>
import jax
import jax.numpy as jnp
from jax.experimental import pallas as pl
from jax.experimental.pallas import tpu as pltpu

_LN_EPS = 1e-5  # torch.nn.LayerNorm default


# ----------------------------------------------------------------------------
# math helpers (used both inside the Pallas kernels and in the reference)
# ----------------------------------------------------------------------------
def _gelu(x):
    # TODO(synk): tanh-approximate GELU (PyTorch nn.GELU() uses exact erf; the
    # two differ by <~1e-3 absolute).  tanh runs on the EUP, off the VALU slot.
    c = 0.7978845608028654  # sqrt(2/pi)
    return 0.5 * x * (1.0 + jnp.tanh(c * (x + 0.044715 * x * x * x)))


def _layernorm(x, g, b):
    mu = jnp.mean(x, axis=-1, keepdims=True)
    var = jnp.mean(jnp.square(x - mu), axis=-1, keepdims=True)
    return (x - mu) * jax.lax.rsqrt(var + _LN_EPS) * g + b


def toeplitz_matrix(w, max_len):
    # SpatialGatingUnit.toeplitz_spatial_weight_matrix():  T[i, j] = w[M-1+j-i]
    i = jnp.arange(max_len)[:, None]
    j = jnp.arange(max_len)[None, :]
    return w[max_len - 1 + j - i]


# ----------------------------------------------------------------------------
# Pallas kernels
# ----------------------------------------------------------------------------
def gmlp_stack_kernel(x_ref, ln_g, ln_b, w1, b1, w2, b2, sg_g, sg_b,
                      toe, sb, wo, bo, out_ref, act_sc):
    """grid = (batch_tiles, n_layers); activations carried in VMEM scratch."""
    layer = pl.program_id(1)

    @pl.when(layer == 0)
    def _():
        act_sc[...] = x_ref[...]

    x = act_sc[...]                                   # (Bt, L, d_in) f32
    bt, seq, d_in = x.shape
    d_out = w1.shape[-1]
    xf = x.reshape(bt * seq, d_in)                    # free leading-dim merge

    # PreNorm (f32 stats), then downcast only for the MXU.
    h = _layernorm(xf, ln_g[0], ln_b[0])
    hb = h.astype(jnp.bfloat16)

    # proj_in split into two lane-dense matmuls (no d_ffn slicing), + GELU.
    x1 = _gelu(jnp.dot(hb, w1[0], preferred_element_type=jnp.float32) + b1[0])
    x2 = _gelu(jnp.dot(hb, w2[0], preferred_element_type=jnp.float32) + b2[0])

    # SpatialGatingUnit: LN(x2), then conv1d(kernel=1) over the sequence axis
    # == per-batch Toeplitz matmul, + bias per output position.
    x2 = _layernorm(x2, sg_g[0], sg_b[0])
    x2b = x2.reshape(bt, seq, d_out).astype(jnp.bfloat16)
    t = jnp.broadcast_to(toe[0], (bt, seq, seq))      # bf16 (Bt, L, L)
    y = jnp.einsum("bij,bjd->bid", t, x2b,
                   preferred_element_type=jnp.float32) + sb[0]
    # TODO(synk): SGU `act` is a constructor argument in PyTorch; identity here.
    gated = x1.reshape(bt, seq, d_out) * y            # f32 gating

    # proj_out + residual.
    g = gated.reshape(bt * seq, d_out).astype(jnp.bfloat16)
    out = jnp.dot(g, wo[0], preferred_element_type=jnp.float32) + bo[0]
    act_sc[...] = out.reshape(bt, seq, d_in) + x

    @pl.when(layer == pl.num_programs(1) - 1)
    def _():
        out_ref[...] = act_sc[...]


def to_logits_kernel(x_ref, ln_g, ln_b, w_ref, b_ref, out_ref):
    """LayerNorm(d_in) + Linear(d_in, n_tokens), tiled over the vocab dim."""
    bt, seq, d_in = x_ref.shape
    xf = x_ref[...].reshape(bt * seq, d_in)
    h = _layernorm(xf, ln_g[...], ln_b[...]).astype(jnp.bfloat16)
    out = jnp.dot(h, w_ref[...], preferred_element_type=jnp.float32) + b_ref[...]
    out_ref[...] = out.reshape(bt, seq, -1)


# ----------------------------------------------------------------------------
# pallas_call wrappers
# ----------------------------------------------------------------------------
_LAYER_KEYS = ("ln_g", "ln_b", "w1", "b1", "w2", "b2",
               "sg_g", "sg_b", "toe", "sg_bias", "w_out", "b_out")


def _vmem_limit(resident_bytes):
    # resident blocks + double-buffering + headroom, clamped to safe bounds.
    return int(min(64 << 20, max(32 << 20, 3 * resident_bytes + (1 << 20))))


def _pick_bt(B, L):
    """Largest batch tile that keeps >=2 grid steps (v7x megacore) and a
    bounded VMEM activation block."""
    best = 1
    for bt in range(1, B + 1):
        if B % bt:
            continue
        if B >= 2 and B // bt < 2:
            continue
        if bt * L <= 1024:
            best = bt
    return best


def _pick_tn(n_tokens):
    for tn in (512, 256, 128):
        if n_tokens % tn == 0:
            return tn
    return n_tokens


def gmlp_stack(x, kp, *, bt):
    B, L, d_in = x.shape
    n_layers = kp["w1"].shape[0]
    assert B % bt == 0

    def layer_spec(arr):
        shape = arr.shape
        return pl.BlockSpec((1,) + shape[1:],
                            lambda b, l: (l,) + (0,) * (len(shape) - 1))

    act_spec = pl.BlockSpec((bt, L, d_in), lambda b, l: (b, 0, 0))

    per_layer_bytes = sum(int(kp[k].nbytes) // n_layers for k in _LAYER_KEYS)
    act_bytes = bt * L * d_in * 4
    vmem_bytes = _vmem_limit(per_layer_bytes + 3 * act_bytes)

    return pl.pallas_call(
        gmlp_stack_kernel,
        out_shape=jax.ShapeDtypeStruct((B, L, d_in), jnp.float32),
        grid=(B // bt, n_layers),
        in_specs=[act_spec] + [layer_spec(kp[k]) for k in _LAYER_KEYS],
        out_specs=pl.BlockSpec((bt, L, d_in), lambda b, l: (b, 0, 0)),
        scratch_shapes=[pltpu.VMEM((bt, L, d_in), jnp.float32)],
        compiler_params=pltpu.CompilerParams(
            dimension_semantics=("parallel", "arbitrary"),
            vmem_limit_bytes=vmem_bytes),
    )(x, *[kp[k] for k in _LAYER_KEYS])


def to_logits(x, kp, *, bt, tn):
    B, L, d_in = x.shape
    n_tokens = kp["logit_w"].shape[1]
    assert B % bt == 0 and n_tokens % tn == 0

    vmem_bytes = _vmem_limit(bt * L * d_in * 4 + d_in * tn * 2
                             + bt * L * tn * 4 + tn * 4)

    return pl.pallas_call(
        to_logits_kernel,
        out_shape=jax.ShapeDtypeStruct((B, L, n_tokens), jnp.float32),
        grid=(B // bt, n_tokens // tn),
        in_specs=[
            pl.BlockSpec((bt, L, d_in), lambda b, j: (b, 0, 0)),
            pl.BlockSpec((1, d_in), lambda b, j: (0, 0)),
            pl.BlockSpec((1, d_in), lambda b, j: (0, 0)),
            pl.BlockSpec((d_in, tn), lambda b, j: (0, j)),
            pl.BlockSpec((1, tn), lambda b, j: (0, j)),
        ],
        out_specs=pl.BlockSpec((bt, L, tn), lambda b, j: (b, 0, j)),
        compiler_params=pltpu.CompilerParams(
            dimension_semantics=("parallel", "parallel"),
            vmem_limit_bytes=vmem_bytes),
    )(x, kp["logit_ln_g"], kp["logit_ln_b"], kp["logit_w"], kp["logit_b"])


def prepare_kernel_params(params, max_len):
    """bf16 matmul weights + prebuilt Toeplitz stack (LN/bias params stay f32)."""
    toe = jax.vmap(lambda w: toeplitz_matrix(w, max_len))(params["sg_w"])
    return dict(
        ln_g=params["ln_g"], ln_b=params["ln_b"],
        w1=params["w1"].astype(jnp.bfloat16), b1=params["b1"],
        w2=params["w2"].astype(jnp.bfloat16), b2=params["b2"],
        sg_g=params["sg_g"], sg_b=params["sg_b"],
        toe=toe.astype(jnp.bfloat16), sg_bias=params["sg_bias"],
        w_out=params["w_out"].astype(jnp.bfloat16), b_out=params["b_out"],
        logit_ln_g=params["logit_ln_g"], logit_ln_b=params["logit_ln_b"],
        logit_w=params["logit_w"].astype(jnp.bfloat16),
        logit_b=params["logit_b"],
    )


def gmlp_forward(params, tokens, max_len, *, bt=None):
    kp = prepare_kernel_params(params, max_len)
    x = params["embedding"][tokens]                   # embedding gather (glue)
    B, L, _ = x.shape
    if bt is None:
        bt = _pick_bt(B, L)
    x = gmlp_stack(x, kp, bt=bt)
    return to_logits(x, kp, bt=bt, tn=_pick_tn(kp["logit_w"].shape[1]))


# ----------------------------------------------------------------------------
# deterministic parameter initialization (stacked layer params; shapes match
# the PyTorch __init__, with proj_in pre-split into w1/w2)
# ----------------------------------------------------------------------------
def init_gmlp_params(key, n_tokens, d_in, d_ffn, max_len, n_layers,
                     init_eps=0.001):
    d_out = d_ffn // 2
    k_emb, k_logit, k_layers = jax.random.split(key, 3)
    eps = init_eps / max_len
    lim_in = 1.0 / (d_in ** 0.5)
    lim_out = 1.0 / (d_out ** 0.5)
    ks = jax.random.split(k_layers, 7)
    params = dict(
        embedding=jax.random.normal(k_emb, (n_tokens, d_in), jnp.float32),
        ln_g=jnp.ones((n_layers, 1, d_in), jnp.float32),
        ln_b=jnp.zeros((n_layers, 1, d_in), jnp.float32),
        w1=jax.random.uniform(ks[0], (n_layers, d_in, d_out), jnp.float32,
                              -lim_in, lim_in),
        w2=jax.random.uniform(ks[1], (n_layers, d_in, d_out), jnp.float32,
                              -lim_in, lim_in),
        b1=jax.random.uniform(ks[2], (n_layers, 1, d_out), jnp.float32,
                              -lim_in, lim_in),
        b2=jax.random.uniform(ks[3], (n_layers, 1, d_out), jnp.float32,
                              -lim_in, lim_in),
        sg_g=jnp.ones((n_layers, 1, d_out), jnp.float32),
        sg_b=jnp.zeros((n_layers, 1, d_out), jnp.float32),
        sg_w=jax.random.uniform(ks[4], (n_layers, 2 * max_len - 1),
                                jnp.float32, -eps, eps),
        sg_bias=jnp.ones((n_layers, max_len, 1), jnp.float32),   # init 1.0
        w_out=jax.random.uniform(ks[5], (n_layers, d_out, d_in), jnp.float32,
                                 -lim_out, lim_out),
        b_out=jax.random.uniform(ks[6], (n_layers, 1, d_in), jnp.float32,
                                 -lim_out, lim_out),
    )
    kw, kb = jax.random.split(k_logit)
    params["logit_ln_g"] = jnp.ones((1, d_in), jnp.float32)
    params["logit_ln_b"] = jnp.zeros((1, d_in), jnp.float32)
    params["logit_w"] = jax.random.uniform(kw, (d_in, n_tokens), jnp.float32,
                                           -lim_in, lim_in)
    params["logit_b"] = jax.random.uniform(kb, (1, n_tokens), jnp.float32,
                                           -lim_in, lim_in)
    return params


# ----------------------------------------------------------------------------
# pure-JAX f32 reference (mirrors the PyTorch forward) for a correctness check
# ----------------------------------------------------------------------------
def gmlp_reference(params, tokens, max_len):
    x = params["embedding"][tokens]
    n_layers = params["w1"].shape[0]
    for l in range(n_layers):
        h = _layernorm(x, params["ln_g"][l, 0], params["ln_b"][l, 0])
        x1 = _gelu(jnp.einsum("bld,df->blf", h, params["w1"][l])
                   + params["b1"][l, 0])
        x2 = _gelu(jnp.einsum("bld,df->blf", h, params["w2"][l])
                   + params["b2"][l, 0])
        x2 = _layernorm(x2, params["sg_g"][l, 0], params["sg_b"][l, 0])
        T = toeplitz_matrix(params["sg_w"][l], max_len)
        y = jnp.einsum("ij,bjd->bid", T, x2) + params["sg_bias"][l]
        out = jnp.einsum("bld,df->blf", x1 * y, params["w_out"][l]) \
            + params["b_out"][l, 0]
        x = out + x
    h = _layernorm(x, params["logit_ln_g"][0], params["logit_ln_b"][0])
    return jnp.einsum("bld,df->blf", h, params["logit_w"]) + params["logit_b"][0]


# ----------------------------------------------------------------------------
if __name__ == "__main__":
    B = 4
    n_tokens = 128      # lane-dense vocab
    d_in = 128          # lane-dense model dim
    d_ffn = 256         # d_out = 128 (lane-dense SGU branch)
    max_len = 16        # sequence length == max_len (conv1d over the seq axis)
    n_layers = 2

    key = jax.random.PRNGKey(0)
    k_params, k_tok = jax.random.split(key)
    params = init_gmlp_params(k_params, n_tokens, d_in, d_ffn, max_len,
                              n_layers)
    tokens = jax.random.randint(k_tok, (B, max_len), 0, n_tokens, jnp.int32)

    logits = jax.block_until_ready(gmlp_forward(params, tokens, max_len))
    ref = jax.block_until_ready(gmlp_reference(params, tokens, max_len))

    assert logits.shape == (B, max_len, n_tokens)
    # Kernel uses bf16 matmul inputs (f32 accumulation); reference is pure f32.
    assert bool(jnp.allclose(logits, ref, atol=2e-2, rtol=2e-2)), (
        "Pallas output mismatch vs pure-JAX reference")

    print("KERNEL_OK")
</pallas_src>

<mosaic_0001>
module attributes {stable_mosaic.version = 11 : i64} {
  func.func @gmlp_stack_kernel(%arg0: i32, %arg1: i32, %arg2: memref<2x16x128xf32, #tpu.memory_space<vmem>>, %arg3: memref<1x1x128xf32, #tpu.memory_space<vmem>>, %arg4: memref<1x1x128xf32, #tpu.memory_space<vmem>>, %arg5: memref<1x128x128xbf16, #tpu.memory_space<vmem>>, %arg6: memref<1x1x128xf32, #tpu.memory_space<vmem>>, %arg7: memref<1x128x128xbf16, #tpu.memory_space<vmem>>, %arg8: memref<1x1x128xf32, #tpu.memory_space<vmem>>, %arg9: memref<1x1x128xf32, #tpu.memory_space<vmem>>, %arg10: memref<1x1x128xf32, #tpu.memory_space<vmem>>, %arg11: memref<1x16x16xbf16, #tpu.memory_space<vmem>>, %arg12: memref<1x16x1xf32, #tpu.memory_space<vmem>>, %arg13: memref<1x128x128xbf16, #tpu.memory_space<vmem>>, %arg14: memref<1x1x128xf32, #tpu.memory_space<vmem>>, %arg15: memref<2x16x128xf32, #tpu.memory_space<vmem>>, %arg16: memref<2x16x128xf32, #tpu.memory_space<vmem>>) attributes {dimension_semantics = [#tpu.dimension_semantics<parallel>, #tpu.dimension_semantics<arbitrary>], iteration_bounds = array<i64: 2, 2>, scalar_prefetch = 0 : i64, scratch_operands = 1 : i64, tpu.core_type = #tpu.core_type<tc>, window_params = [{transform_indices = @transform_0, window_bounds = array<i64: 2, 16, 128>}, {transform_indices = @transform_1, window_bounds = array<i64: 1, 1, 128>}, {transform_indices = @transform_2, window_bounds = array<i64: 1, 1, 128>}, {transform_indices = @transform_3, window_bounds = array<i64: 1, 128, 128>}, {transform_indices = @transform_4, window_bounds = array<i64: 1, 1, 128>}, {transform_indices = @transform_5, window_bounds = array<i64: 1, 128, 128>}, {transform_indices = @transform_6, window_bounds = array<i64: 1, 1, 128>}, {transform_indices = @transform_7, window_bounds = array<i64: 1, 1, 128>}, {transform_indices = @transform_8, window_bounds = array<i64: 1, 1, 128>}, {transform_indices = @transform_9, window_bounds = array<i64: 1, 16, 16>}, {transform_indices = @transform_10, window_bounds = array<i64: 1, 16, 1>}, {transform_indices = @transform_11, window_bounds = array<i64: 1, 128, 128>}, {transform_indices = @transform_12, window_bounds = array<i64: 1, 1, 128>}, {transform_indices = @transform_13, window_bounds = array<i64: 2, 16, 128>}]} {
    %c0_i32 = arith.constant 0 : i32
    %0 = arith.cmpi eq, %arg1, %c0_i32 : i32
    %1 = arith.extui %0 : i1 to i32
    %c0_i32_0 = arith.constant 0 : i32
    %2 = arith.cmpi ne, %1, %c0_i32_0 : i32
    scf.if %2 {
      %c0_64 = arith.constant 0 : index
      %c0_65 = arith.constant 0 : index
      %c0_66 = arith.constant 0 : index
      %127 = vector.load %arg2[%c0_64, %c0_65, %c0_66] : memref<2x16x128xf32, #tpu.memory_space<vmem>>, vector<2x16x128xf32>
      %c0_67 = arith.constant 0 : index
      %c0_68 = arith.constant 0 : index
      %c0_69 = arith.constant 0 : index
      %128 = vector.load %arg16[%c0_67, %c0_68, %c0_69] : memref<2x16x128xf32, #tpu.memory_space<vmem>>, vector<2x16x128xf32>
      tpu.vector_store %arg16[%c0_67, %c0_68, %c0_69], %127 {strides = array<i32>} : memref<2x16x128xf32, #tpu.memory_space<vmem>>, vector<2x16x128xf32>,
    } else {
    }
    %c0 = arith.constant 0 : index
    %c0_1 = arith.constant 0 : index
    %c0_2 = arith.constant 0 : index
    %3 = vector.load %arg16[%c0, %c0_1, %c0_2] : memref<2x16x128xf32, #tpu.memory_space<vmem>>, vector<2x16x128xf32>
    %4 = vector.shape_cast %3 : vector<2x16x128xf32> to vector<32x128xf32>
    %c0_3 = arith.constant 0 : index
    %c0_4 = arith.constant 0 : index
    %c0_5 = arith.constant 0 : index
    %5 = vector.load %arg3[%c0_3, %c0_4, %c0_5] : memref<1x1x128xf32, #tpu.memory_space<vmem>>, vector<1x1x128xf32>
    %6 = vector.shape_cast %5 : vector<1x1x128xf32> to vector<1x128xf32>
    %c0_6 = arith.constant 0 : index
    %c0_7 = arith.constant 0 : index
    %c0_8 = arith.constant 0 : index
    %7 = vector.load %arg4[%c0_6, %c0_7, %c0_8] : memref<1x1x128xf32, #tpu.memory_space<vmem>>, vector<1x1x128xf32>
    %8 = vector.shape_cast %7 : vector<1x1x128xf32> to vector<1x128xf32>
    %cst = arith.constant dense<0.000000e+00> : vector<32xf32>
    %9 = vector.multi_reduction <add>, %4, %cst [1] : vector<32x128xf32> to vector<32xf32>
    %10 = vector.shape_cast %9 : vector<32xf32> to vector<32x1xf32>
    %cst_9 = arith.constant 1.280000e+02 : f32
    %11 = vector.broadcast %cst_9 : f32 to vector<32x1xf32>
    %12 = arith.divf %10, %11 : vector<32x1xf32>
    %13 = vector.broadcast %12 : vector<32x1xf32> to vector<32x128xf32>
    %14 = arith.subf %4, %13 : vector<32x128xf32>
    %15 = arith.mulf %14, %14 : vector<32x128xf32>
    %cst_10 = arith.constant dense<0.000000e+00> : vector<32xf32>
    %16 = vector.multi_reduction <add>, %15, %cst_10 [1] : vector<32x128xf32> to vector<32xf32>
    %17 = vector.shape_cast %16 : vector<32xf32> to vector<32x1xf32>
    %cst_11 = arith.constant 1.280000e+02 : f32
    %18 = vector.broadcast %cst_11 : f32 to vector<32x1xf32>
    %19 = arith.divf %17, %18 : vector<32x1xf32>
    %20 = vector.broadcast %12 : vector<32x1xf32> to vector<32x128xf32>
    %21 = arith.subf %4, %20 : vector<32x128xf32>
    %cst_12 = arith.constant 9.99999974E-6 : f32
    %22 = vector.broadcast %cst_12 : f32 to vector<32x1xf32>
    %23 = arith.addf %19, %22 : vector<32x1xf32>
    %24 = math.rsqrt %23 : vector<32x1xf32>
    %25 = vector.broadcast %24 : vector<32x1xf32> to vector<32x128xf32>
    %26 = arith.mulf %21, %25 : vector<32x128xf32>
    %27 = vector.broadcast %6 : vector<1x128xf32> to vector<32x128xf32>
    %28 = arith.mulf %26, %27 : vector<32x128xf32>
    %29 = vector.broadcast %8 : vector<1x128xf32> to vector<32x128xf32>
    %30 = arith.addf %28, %29 : vector<32x128xf32>
    %31 = arith.truncf %30 : vector<32x128xf32> to vector<32x128xbf16>
    %c0_13 = arith.constant 0 : index
    %c0_14 = arith.constant 0 : index
    %c0_15 = arith.constant 0 : index
    %32 = vector.load %arg5[%c0_13, %c0_14, %c0_15] : memref<1x128x128xbf16, #tpu.memory_space<vmem>>, vector<1x128x128xbf16>
    %33 = vector.shape_cast %32 : vector<1x128x128xbf16> to vector<128x128xbf16>
    %cst_16 = arith.constant dense<0.000000e+00> : vector<32x128xf32>
    %34 = tpu.matmul %31, %33, %cst_16 {dimension_numbers = #tpu.dot_dimension_numbers<[1], [0], [0], [1], [0, 0, 1, 1], [], []>} : vector<32x128xbf16>, vector<128x128xbf16>, vector<32x128xf32> -> vector<32x128xf32>
    %c0_17 = arith.constant 0 : index
    %c0_18 = arith.constant 0 : index
    %c0_19 = arith.constant 0 : index
    %35 = vector.load %arg6[%c0_17, %c0_18, %c0_19] : memref<1x1x128xf32, #tpu.memory_space<vmem>>, vector<1x1x128xf32>
    %36 = vector.shape_cast %35 : vector<1x1x128xf32> to vector<1x128xf32>
    %37 = vector.broadcast %36 : vector<1x128xf32> to vector<32x128xf32>
    %38 = arith.addf %34, %37 : vector<32x128xf32>
    %cst_20 = arith.constant 5.000000e-01 : f32
    %39 = vector.broadcast %cst_20 : f32 to vector<32x128xf32>
    %40 = arith.mulf %39, %38 : vector<32x128xf32>
    %cst_21 = arith.constant 4.471500e-02 : f32
    %41 = vector.broadcast %cst_21 : f32 to vector<32x128xf32>
    %42 = arith.mulf %41, %38 : vector<32x128xf32>
    %43 = arith.mulf %42, %38 : vector<32x128xf32>
    %44 = arith.mulf %43, %38 : vector<32x128xf32>
    %45 = arith.addf %38, %44 : vector<32x128xf32>
    %cst_22 = arith.constant 0.797884583 : f32
    %46 = vector.broadcast %cst_22 : f32 to vector<32x128xf32>
    %47 = arith.mulf %46, %45 : vector<32x128xf32>
    %48 = math.tanh %47 : vector<32x128xf32>
    %cst_23 = arith.constant 1.000000e+00 : f32
    %49 = vector.broadcast %cst_23 : f32 to vector<32x128xf32>
    %50 = arith.addf %49, %48 : vector<32x128xf32>
    %51 = arith.mulf %40, %50 : vector<32x128xf32>
    %c0_24 = arith.constant 0 : index
    %c0_25 = arith.constant 0 : index
    %c0_26 = arith.constant 0 : index
    %52 = vector.load %arg7[%c0_24, %c0_25, %c0_26] : memref<1x128x128xbf16, #tpu.memory_space<vmem>>, vector<1x128x128xbf16>
    %53 = vector.shape_cast %52 : vector<1x128x128xbf16> to vector<128x128xbf16>
    %cst_27 = arith.constant dense<0.000000e+00> : vector<32x128xf32>
    %54 = tpu.matmul %31, %53, %cst_27 {dimension_numbers = #tpu.dot_dimension_numbers<[1], [0], [0], [1], [0, 0, 1, 1], [], []>} : vector<32x128xbf16>, vector<128x128xbf16>, vector<32x128xf32> -> vector<32x128xf32>
    %c0_28 = arith.constant 0 : index
    %c0_29 = arith.constant 0 : index
    %c0_30 = arith.constant 0 : index
    %55 = vector.load %arg8[%c0_28, %c0_29, %c0_30] : memref<1x1x128xf32, #tpu.memory_space<vmem>>, vector<1x1x128xf32>
    %56 = vector.shape_cast %55 : vector<1x1x128xf32> to vector<1x128xf32>
    %57 = vector.broadcast %56 : vector<1x128xf32> to vector<32x128xf32>
    %58 = arith.addf %54, %57 : vector<32x128xf32>
    %cst_31 = arith.constant 5.000000e-01 : f32
    %59 = vector.broadcast %cst_31 : f32 to vector<32x128xf32>
    %60 = arith.mulf %59, %58 : vector<32x128xf32>
    %cst_32 = arith.constant 4.471500e-02 : f32
    %61 = vector.broadcast %cst_32 : f32 to vector<32x128xf32>
    %62 = arith.mulf %61, %58 : vector<32x128xf32>
    %63 = arith.mulf %62, %58 : vector<32x128xf32>
    %64 = arith.mulf %63, %58 : vector<32x128xf32>
    %65 = arith.addf %58, %64 : vector<32x128xf32>
    %cst_33 = arith.constant 0.797884583 : f32
    %66 = vector.broadcast %cst_33 : f32 to vector<32x128xf32>
    %67 = arith.mulf %66, %65 : vector<32x128xf32>
    %68 = math.tanh %67 : vector<32x128xf32>
    %cst_34 = arith.constant 1.000000e+00 : f32
    %69 = vector.broadcast %cst_34 : f32 to vector<32x128xf32>
    %70 = arith.addf %69, %68 : vector<32x128xf32>
    %71 = arith.mulf %60, %70 : vector<32x128xf32>
    %c0_35 = arith.constant 0 : index
    %c0_36 = arith.constant 0 : index
    %c0_37 = arith.constant 0 : index
    %72 = vector.load %arg9[%c0_35, %c0_36, %c0_37] : memref<1x1x128xf32, #tpu.memory_space<vmem>>, vector<1x1x128xf32>
    %73 = vector.shape_cast %72 : vector<1x1x128xf32> to vector<1x128xf32>
    %c0_38 = arith.constant 0 : index
    %c0_39 = arith.constant 0 : index
    %c0_40 = arith.constant 0 : index
    %74 = vector.load %arg10[%c0_38, %c0_39, %c0_40] : memref<1x1x128xf32, #tpu.memory_space<vmem>>, vector<1x1x128xf32>
    %75 = vector.shape_cast %74 : vector<1x1x128xf32> to vector<1x128xf32>
    %cst_41 = arith.constant dense<0.000000e+00> : vector<32xf32>
    %76 = vector.multi_reduction <add>, %71, %cst_41 [1] : vector<32x128xf32> to vector<32xf32>
    %77 = vector.shape_cast %76 : vector<32xf32> to vector<32x1xf32>
    %cst_42 = arith.constant 1.280000e+02 : f32
    %78 = vector.broadcast %cst_42 : f32 to vector<32x1xf32>
    %79 = arith.divf %77, %78 : vector<32x1xf32>
    %80 = vector.broadcast %79 : vector<32x1xf32> to vector<32x128xf32>
    %81 = arith.subf %71, %80 : vector<32x128xf32>
    %82 = arith.mulf %81, %81 : vector<32x128xf32>
    %cst_43 = arith.constant dense<0.000000e+00> : vector<32xf32>
    %83 = vector.multi_reduction <add>, %82, %cst_43 [1] : vector<32x128xf32> to vector<32xf32>
    %84 = vector.shape_cast %83 : vector<32xf32> to vector<32x1xf32>
    %cst_44 = arith.constant 1.280000e+02 : f32
    %85 = vector.broadcast %cst_44 : f32 to vector<32x1xf32>
    %86 = arith.divf %84, %85 : vector<32x1xf32>
    %87 = vector.broadcast %79 : vector<32x1xf32> to vector<32x128xf32>
    %88 = arith.subf %71, %87 : vector<32x128xf32>
    %cst_45 = arith.constant 9.99999974E-6 : f32
    %89 = vector.broadcast %cst_45 : f32 to vector<32x1xf32>
    %90 = arith.addf %86, %89 : vector<32x1xf32>
    %91 = math.rsqrt %90 : vector<32x1xf32>
    %92 = vector.broadcast %91 : vector<32x1xf32> to vector<32x128xf32>
    %93 = arith.mulf %88, %92 : vector<32x128xf32>
    %94 = vector.broadcast %73 : vector<1x128xf32> to vector<32x128xf32>
    %95 = arith.mulf %93, %94 : vector<32x128xf32>
    %96 = vector.broadcast %75 : vector<1x128xf32> to vector<32x128xf32>
    %97 = arith.addf %95, %96 : vector<32x128xf32>
    %98 = vector.shape_cast %97 : vector<32x128xf32> to vector<2x16x128xf32>
    %99 = arith.truncf %98 : vector<2x16x128xf32> to vector<2x16x128xbf16>
    %c0_46 = arith.constant 0 : index
    %c0_47 = arith.constant 0 : index
    %c0_48 = arith.constant 0 : index
    %100 = vector.load %arg11[%c0_46, %c0_47, %c0_48] : memref<1x16x16xbf16, #tpu.memory_space<vmem>>, vector<1x16x16xbf16>
    %101 = vector.shape_cast %100 : vector<1x16x16xbf16> to vector<16x16xbf16>
    %102 = vector.shape_cast %101 : vector<16x16xbf16> to vector<1x16x16xbf16>
    %103 = vector.broadcast %102 : vector<1x16x16xbf16> to vector<2x16x16xbf16>
    "tpu.trace_start"() <{level = 10 : i32, message = "bij,bjd->bid"}> : () -> ()
    %cst_49 = arith.constant dense<0.000000e+00> : vector<2x16x128xf32>
    %104 = tpu.matmul %103, %99, %cst_49 {dimension_numbers = #tpu.dot_dimension_numbers<[2], [1], [1], [2], [0, 0, 0, 1, 1, 2], [0], [0]>} : vector<2x16x16xbf16>, vector<2x16x128xbf16>, vector<2x16x128xf32> -> vector<2x16x128xf32>
    "tpu.trace_stop"() : () -> ()
    %c0_50 = arith.constant 0 : index
    %c0_51 = arith.constant 0 : index
    %c0_52 = arith.constant 0 : index
    %105 = vector.load %arg12[%c0_50, %c0_51, %c0_52] : memref<1x16x1xf32, #tpu.memory_space<vmem>>, vector<1x16x1xf32>
    %106 = vector.shape_cast %105 : vector<1x16x1xf32> to vector<16x1xf32>
    %107 = vector.shape_cast %106 : vector<16x1xf32> to vector<1x16x1xf32>
    %108 = vector.broadcast %107 : vector<1x16x1xf32> to vector<2x16x128xf32>
    %109 = arith.addf %104, %108 : vector<2x16x128xf32>
    %110 = vector.shape_cast %51 : vector<32x128xf32> to vector<2x16x128xf32>
    %111 = arith.mulf %110, %109 : vector<2x16x128xf32>
    %112 = vector.shape_cast %111 : vector<2x16x128xf32> to vector<32x128xf32>
    %113 = arith.truncf %112 : vector<32x128xf32> to vector<32x128xbf16>
    %c0_53 = arith.constant 0 : index
    %c0_54 = arith.constant 0 : index
    %c0_55 = arith.constant 0 : index
    %114 = vector.load %arg13[%c0_53, %c0_54, %c0_55] : memref<1x128x128xbf16, #tpu.memory_space<vmem>>, vector<1x128x128xbf16>
    %115 = vector.shape_cast %114 : vector<1x128x128xbf16> to vector<128x128xbf16>
    %cst_56 = arith.constant dense<0.000000e+00> : vector<32x128xf32>
    %116 = tpu.matmul %113, %115, %cst_56 {dimension_numbers = #tpu.dot_dimension_numbers<[1], [0], [0], [1], [0, 0, 1, 1], [], []>} : vector<32x128xbf16>, vector<128x128xbf16>, vector<32x128xf32> -> vector<32x128xf32>
    %c0_57 = arith.constant 0 : index
    %c0_58 = arith.constant 0 : index
    %c0_59 = arith.constant 0 : index
    %117 = vector.load %arg14[%c0_57, %c0_58, %c0_59] : memref<1x1x128xf32, #tpu.memory_space<vmem>>, vector<1x1x128xf32>
    %118 = vector.shape_cast %117 : vector<1x1x128xf32> to vector<1x128xf32>
    %119 = vector.broadcast %118 : vector<1x128xf32> to vector<32x128xf32>
    %120 = arith.addf %116, %119 : vector<32x128xf32>
    %121 = vector.shape_cast %120 : vector<32x128xf32> to vector<2x16x128xf32>
    %122 = arith.addf %121, %3 : vector<2x16x128xf32>
    %c0_60 = arith.constant 0 : index
    %c0_61 = arith.constant 0 : index
    %c0_62 = arith.constant 0 : index
    %123 = vector.load %arg16[%c0_60, %c0_61, %c0_62] : memref<2x16x128xf32, #tpu.memory_space<vmem>>, vector<2x16x128xf32>
    tpu.vector_store %arg16[%c0_60, %c0_61, %c0_62], %122 {strides = array<i32>} : memref<2x16x128xf32, #tpu.memory_space<vmem>>, vector<2x16x128xf32>,
    %c1_i32 = arith.constant 1 : i32
    %124 = arith.cmpi eq, %arg1, %c1_i32 : i32
    %125 = arith.extui %124 : i1 to i32
    %c0_i32_63 = arith.constant 0 : i32
    %126 = arith.cmpi ne, %125, %c0_i32_63 : i32
    scf.if %126 {
      %c0_64 = arith.constant 0 : index
      %c0_65 = arith.constant 0 : index
      %c0_66 = arith.constant 0 : index
      %127 = vector.load %arg16[%c0_64, %c0_65, %c0_66] : memref<2x16x128xf32, #tpu.memory_space<vmem>>, vector<2x16x128xf32>
      %c0_67 = arith.constant 0 : index
      %c0_68 = arith.constant 0 : index
      %c0_69 = arith.constant 0 : index
      %128 = vector.load %arg15[%c0_67, %c0_68, %c0_69] : memref<2x16x128xf32, #tpu.memory_space<vmem>>, vector<2x16x128xf32>
      tpu.vector_store %arg15[%c0_67, %c0_68, %c0_69], %127 {strides = array<i32>} : memref<2x16x128xf32, #tpu.memory_space<vmem>>, vector<2x16x128xf32>,
    } else {
    }
    return
  }
  func.func @transform_0(%arg0: i32, %arg1: i32) -> (i32, i32, i32) {
    %c0_i32 = arith.constant 0 : i32
    %c0_i32_0 = arith.constant 0 : i32
    %c0_i32_1 = arith.constant 0 : i32
    return %arg0, %c0_i32, %c0_i32_0 : i32, i32, i32
  }
  func.func @transform_1(%arg0: i32, %arg1: i32) -> (i32, i32, i32) {
    %c0_i32 = arith.constant 0 : i32
    %c0_i32_0 = arith.constant 0 : i32
    %c0_i32_1 = arith.constant 0 : i32
    return %arg1, %c0_i32, %c0_i32_0 : i32, i32, i32
  }
  func.func @transform_2(%arg0: i32, %arg1: i32) -> (i32, i32, i32) {
    %c0_i32 = arith.constant 0 : i32
    %c0_i32_0 = arith.constant 0 : i32
    %c0_i32_1 = arith.constant 0 : i32
    return %arg1, %c0_i32, %c0_i32_0 : i32, i32, i32
  }
  func.func @transform_3(%arg0: i32, %arg1: i32) -> (i32, i32, i32) {
    %c0_i32 = arith.constant 0 : i32
    %c0_i32_0 = arith.constant 0 : i32
    %c0_i32_1 = arith.constant 0 : i32
    return %arg1, %c0_i32, %c0_i32_0 : i32, i32, i32
  }
  func.func @transform_4(%arg0: i32, %arg1: i32) -> (i32, i32, i32) {
    %c0_i32 = arith.constant 0 : i32
    %c0_i32_0 = arith.constant 0 : i32
    %c0_i32_1 = arith.constant 0 : i32
    return %arg1, %c0_i32, %c0_i32_0 : i32, i32, i32
  }
  func.func @transform_5(%arg0: i32, %arg1: i32) -> (i32, i32, i32) {
    %c0_i32 = arith.constant 0 : i32
    %c0_i32_0 = arith.constant 0 : i32
    %c0_i32_1 = arith.constant 0 : i32
    return %arg1, %c0_i32, %c0_i32_0 : i32, i32, i32
  }
  func.func @transform_6(%arg0: i32, %arg1: i32) -> (i32, i32, i32) {
    %c0_i32 = arith.constant 0 : i32
    %c0_i32_0 = arith.constant 0 : i32
    %c0_i32_1 = arith.constant 0 : i32
    return %arg1, %c0_i32, %c0_i32_0 : i32, i32, i32
  }
  func.func @transform_7(%arg0: i32, %arg1: i32) -> (i32, i32, i32) {
    %c0_i32 = arith.constant 0 : i32
    %c0_i32_0 = arith.constant 0 : i32
    %c0_i32_1 = arith.constant 0 : i32
    return %arg1, %c0_i32, %c0_i32_0 : i32, i32, i32
  }
  func.func @transform_8(%arg0: i32, %arg1: i32) -> (i32, i32, i32) {
    %c0_i32 = arith.constant 0 : i32
    %c0_i32_0 = arith.constant 0 : i32
    %c0_i32_1 = arith.constant 0 : i32
    return %arg1, %c0_i32, %c0_i32_0 : i32, i32, i32
  }
  func.func @transform_9(%arg0: i32, %arg1: i32) -> (i32, i32, i32) {
    %c0_i32 = arith.constant 0 : i32
    %c0_i32_0 = arith.constant 0 : i32
    %c0_i32_1 = arith.constant 0 : i32
    return %arg1, %c0_i32, %c0_i32_0 : i32, i32, i32
  }
  func.func @transform_10(%arg0: i32, %arg1: i32) -> (i32, i32, i32) {
    %c0_i32 = arith.constant 0 : i32
    %c0_i32_0 = arith.constant 0 : i32
    %c0_i32_1 = arith.constant 0 : i32
    return %arg1, %c0_i32, %c0_i32_0 : i32, i32, i32
  }
  func.func @transform_11(%arg0: i32, %arg1: i32) -> (i32, i32, i32) {
    %c0_i32 = arith.constant 0 : i32
    %c0_i32_0 = arith.constant 0 : i32
    %c0_i32_1 = arith.constant 0 : i32
    return %arg1, %c0_i32, %c0_i32_0 : i32, i32, i32
  }
  func.func @transform_12(%arg0: i32, %arg1: i32) -> (i32, i32, i32) {
    %c0_i32 = arith.constant 0 : i32
    %c0_i32_0 = arith.constant 0 : i32
    %c0_i32_1 = arith.constant 0 : i32
    return %arg1, %c0_i32, %c0_i32_0 : i32, i32, i32
  }
  func.func @transform_13(%arg0: i32, %arg1: i32) -> (i32, i32, i32) {
    %c0_i32 = arith.constant 0 : i32
    %c0_i32_0 = arith.constant 0 : i32
    %c0_i32_1 = arith.constant 0 : i32
    return %arg0, %c0_i32, %c0_i32_0 : i32, i32, i32
  }
}

</mosaic_0001>

<bundles_post_ra>
// kernel: tpu_custom_call.1
= control target key start
LH: loop header
LB: loop body
LE: loop exit
PB: predicated region body
PF: predicated region fallthrough
CT: control target
= control target key end

     0   :  { %s2993_s0 = inlined_call_operand.hbm [shape: f32[4,16,128], index: 0, kind: input, shape index: {}]   ;;  %s2994_s1 = inlined_call_operand.vmem [shape: f32[2,1,128], index: 1, kind: input, shape index: {}]   ;;  %s2995_s2 = inlined_call_operand.vmem [shape: f32[2,1,128], index: 2, kind: input, shape index: {}]   ;;  %s2996_s3 = inlined_call_operand.hbm [shape: bf16[2,128,128], index: 3, kind: input, shape index: {}]   ;;  %s2997_s4 = inlined_call_operand.vmem [shape: f32[2,1,128], index: 4, kind: input, shape index: {}]   ;;  %s2998_s5 = inlined_call_operand.hbm [shape: bf16[2,128,128], index: 5, kind: input, shape index: {}]   ;;  %s2999_s6 = inlined_call_operand.vmem [shape: f32[2,1,128], index: 6, kind: input, shape index: {}]   ;;  %s3000_s7 = inlined_call_operand.vmem [shape: f32[2,1,128], index: 7, kind: input, shape index: {}]   ;;  %s3001_s8 = inlined_call_operand.vmem [shape: f32[2,1,128], index: 8, kind: input, shape index: {}]   ;;  %s3002_s9 = inlined_call_operand.vmem [shape: bf16[2,16,16], index: 9, kind: input, shape index: {}]   ;;  %s3003_s10 = inlined_call_operand.vmem [shape: f32[2,16,1], index: 10, kind: input, shape index: {}]   ;;  %s3004_s11 = inlined_call_operand.hbm [shape: bf16[2,128,128], index: 11, kind: input, shape index: {}]   ;;  %s3005_s12 = inlined_call_operand.vmem [shape: f32[2,1,128], index: 12, kind: input, shape index: {}]   ;;  %s3006_s13 = inlined_call_operand.hbm [shape: f32[4,16,128], index: 13, kind: output, shape index: {}]  }
   0x1   :  { %3035 = sst [smem:[#allocation31_spill]] %s2993_s0 }
   0x2   :  { %3036 = sst [smem:[#allocation32_spill]] %s2994_s1 }
   0x3   :  { %3037 = sst [smem:[#allocation33_spill]] %s2995_s2 }
   0x4   :  { %3038 = sst [smem:[#allocation34_spill]] %s2996_s3 }
   0x5   :  { %3039 = sst [smem:[#allocation35_spill]] %s2997_s4 }
   0x6   :  { %3040 = sst [smem:[#allocation36_spill]] %s2998_s5 }
   0x7   :  { %3041 = sst [smem:[#allocation37_spill]] %s2999_s6 }
   0x8   :  { %3042 = sst [smem:[#allocation38_spill]] %s3000_s7 }
   0x9   :  { %3043 = sst [smem:[#allocation39_spill]] %s3001_s8 }
   0xa   :  { %3044 = sst [smem:[#allocation40_spill]] %s3002_s9 }
   0xb   :  { %3045 = sst [smem:[#allocation41_spill]] %s3003_s10 }
   0xc   :  { %3046 = sst [smem:[#allocation42_spill]] %s3004_s11 }
   0xd   :  { %3047 = sst [smem:[#allocation43_spill]] %s3005_s12 }
   0xe   :  { %3048 = sst [smem:[#allocation44_spill]] %s3006_s13 }
   0xf   :  { %18 = vsyncpa [#allocation4], 0 }
  0x10   :  { %20 = vsyncpa [#allocation4 + $0x1], 0 }
  0x11   :  { %21 = vsyncpa [#allocation7], 0 }
  0x12   :  { %23 = vsyncpa [#allocation7 + $0x1], 0 }
  0x13   :  { %24 = vsyncpa [#allocation10], 0 }
  0x14   :  { %26 = vsyncpa [#allocation10 + $0x1], 0 }
  0x15   :  { %27 = vsyncpa [#allocation5], 0 }
  0x16   :  { %29 = vsyncpa [#allocation5 + $0x1], 0  ;;  %s2403_s25 = smov 0   ;;  %s2405_s26 = smov 0  }
  0x17   :  { %s2407_s27 = smov 0   ;;  %s2409_s28 = smov 0  }
  0x18   :  { %s2411_s29 = smov 0   ;;  %s2413_s30 = smov 0  }
  0x19   :  { %s2415_s14 = smov 0   ;;  %s2417_s15 = smov 0  }
  0x1a   :  { %s2419_s16 = smov 0   ;;  %s2421_s17 = smov 0  }
  0x1b   :  { %s2423_s18 = smov 0  }
  0x1c LB: > { %3049 = sst [smem:[#allocation16_spill]] %s2281_s26  ;;  %s44_s19 = sadd.s32 1, %s2309_s16  ;;  %s2317_s18 = sphi %s2423_s18, %s35_s18   ;;  %s2313_s17 = sphi %s2421_s17, %s3128_s17   ;;  %s2309_s16 = sphi %s2419_s16, %s3127_s16   ;;  %s2305_s15 = sphi %s2417_s15, %s3126_s15   ;;  %s2301_s14 = sphi %s2415_s14, %s3125_s14   ;;  %s2297_s30 = sphi %s2413_s30, %s3124_s30   ;;  %s2293_s29 = sphi %s2411_s29, %s3123_s29   ;;  %s2289_s28 = sphi %s2409_s28, %s3122_s28   ;;  %s2285_s27 = sphi %s2407_s27, %s3121_s27   ;;  %s2281_s26 = sphi %s2405_s26, %s3120_s26   ;;  %s2277_s25 = sphi %s2403_s25, %s3119_s25  }
  0x1d   : > { %3050 = sst [smem:[#allocation17_spill]] %s2285_s27  ;;  %p3012_p0 = scmp.eq.s32.totalorder %s2317_s18, 0 }
  0x1e   : > { %3051 = sst [smem:[#allocation18_spill]] %s2289_s28  ;;  %p2460_p1 = scmp.ge.s32.totalorder %s44_s19, 2 }
  0x1f   : > { %3052 = sst [smem:[#allocation19_spill]] %s2293_s29  ;;  %s132_s21 = sadd.s32 1, %s2285_s27 }
  0x20   : > { %3053 = sst [smem:[#allocation20_spill]] %s2297_s30  ;;  %p139_p2 = scmp.ne.s32.totalorder %s2285_s27, %s2281_s26 }
  0x21   : > { %3054 = sst [smem:[#allocation21_spill]] %s2301_s14  ;;  %s3130_s19 = smov (%p2460_p1, %s44_s19), 0 }
  0x22   : > { %3055 = sst [smem:[#allocation22_spill]] %s2305_s15  ;;  %p141_p4 = por %p139_p2, %p3012_p0 }
  0x23   : > { %3056 = sst [smem:[#allocation23_spill]] %s2309_s16  ;;  %s129_s22 = ssub.s32 %s2309_s16, %s3130_s19 }
  0x24   : > { %3057 = sst [smem:[#allocation24_spill]] %s2313_s17  ;;  %p3011_p5 = scmp.lt.s32.totalorder %s2317_s18, 4 }
  0x25   : > { %s3058_s20 = scalar_select %p2460_p1, 1, 0 }
  0x26   : > { %3059 = sst [smem:[#allocation25_spill]] %s3130_s19  ;;  %p130_p6 = scmp.eq.s32.totalorder %s129_s22, 0 }
  0x27   : > { %s463_s23 = sand.u32 1, %s2317_s18   ;;  %s3009_s24 = sand.u32 1, %s2285_s27  }
  0x28   : > { %s2481_s13 = scalar_select %p130_p6, %s2285_s27, %s132_s21  }
  0x29   : > { %s2485_s15 = sshll.u32 %s3009_s24, 6  ;;  %s2488_s12 = sshll.u32 %s2309_s16, 10 }
  0x2a   : > { %3060 = sst [smem:[#allocation26_spill]] %s2481_s13  ;;  %s3061_s3 = sld [smem:[#allocation34_spill]] }
  0x2b   : > { %s467_s22 = scalar_lea.vmem [#allocation6], %s2485_s15  ;;  %p2499_p7 = pnand %p3011_p5, %p141_p4 }
  0x2c   : > { %s474_s19 = sshll.u32 %s467_s22, 4  ;;  %s2505_s24 = scalar_lea.sflag [#allocation7], %s463_s23  ;;  %s2503_s19 = int_to_ptr.vmem [resolvable:$true] %s474_s19 }
  0x2d   : > { %s3062_s21 = scalar_select %p2499_p7, 1, 0 }
  0x2e   : > { %p2511_p9 = pneg %p2499_p7 }
  0x30   : > { %s2494_s8 = scalar_lea.hbm %s3061_s3, %s2488_s12  ;;  %s2072_s13 = scalar_lea.hbm %s3061_s3, 2048 }
  0x31   : > { %s2067_s16 = scalar_lea.hbm %s2494_s8, 1024  ;;  %p2073_p12 = scmp.lt.u32.totalorder %s2494_s8, %s3061_s3 }
  0x32   : > { %p2068_p8 = scmp.ne.s32.totalorder %s2494_s8, %s2067_s16  ;;  %p2074_p13 = scmp.lt.u32.totalorder %s2072_s13, %s2067_s16 }
  0x33   : > { %p2076_p4 = scmp.lt.u32.totalorder %s2067_s16, %s2494_s8 }
  0x34   : > { %p2070_p10 = pnand %p2511_p9, %p2068_p8  ;;  %p2075_p2 = por %p2074_p13, %p2073_p12 }
  0x36   : > { %p2071_p11 = pneg %p2070_p10  ;;  %p2077_p6 = por %p2076_p4, %p2075_p2 }
  0x38   : > { %p2078_p5 = pnand %p2077_p6, %p2071_p11 }
  0x3a   : > { %2081 = shalt.err (!%p2078_p5)
}
  0x3b   : > { %s2082_s23 = scalar_lea.vmem %s2503_s19, 1024  ;;  %s2319_s10 = smov [#allocation6]  }
  0x3c   : > { %p2083_p8 = scmp.ne.s32.totalorder %s2503_s19, %s2082_s23  ;;  %s2087_s22 = sshll.u32 %s2319_s10, 4  ;;  %s2088_s22 = int_to_ptr.vmem [resolvable:$false] %s2087_s22 }
  0x3d   : > { %s2089_s6 = scalar_lea.vmem %s2088_s22, 2048  ;;  %p2090_p0 = scmp.lt.s32.totalorder %s2503_s19, %s2088_s22 }
  0x3e   : > { %p2085_p10 = pnand %p2083_p8, %p2511_p9  ;;  %p2091_p1 = scmp.lt.s32.totalorder %s2089_s6, %s2082_s23 }
  0x40   : > { %p2086_p3 = pneg %p2085_p10  ;;  %p2092_p12 = por %p2091_p1, %p2090_p0 }
  0x42   : > { %p2093_p13 = pnand %p2092_p12, %p2086_p3 }
  0x44   : > { %2096 = shalt.err (!%p2093_p13)
}
  0x45   : > { %s3014_s7 = smov 64   ;;  %s3016_s13 = smov 4  }
  0x46   : > { %1898 = dma.hbm_to_vmem [thread:$0]  (!%p2499_p7), %s2494_s8, 1024, %s2503_s19, %s2505_s24, %s3014_s7, %s3014_s7, %s3016_s13  }
  0x47   : > { %p1715_p0 = scmp.ge.s32.totalorder %s2317_s18, 1  ;;  %p570_p1 = scmp.lt.s32.totalorder %s2317_s18, 5 }
  0x48   : > { %s2545_s23 = sadd.s32 4294967295, %s2317_s18   ;;  %s1699_s10 = sadd.s32 4294967294, %s2317_s18  }
  0x49   : > { %p2540_p3 = pnand %p1715_p0, %p570_p1  ;;  %s47_s22 = sadd.s32 1, %s2313_s17 }
  0x4a   : > { %p3065_p5 = scmp.ne.s32.totalorder %s3058_s20, 0  ;;  %s54_s8 = sadd.s32 1, %s2297_s30 }
  0x4b   : > { %s3064_s16 = scalar_select %p2540_p3, 1, 0 }
  0x4c   : > { %s3132_s22 = smov (!%p3065_p5, %s47_s22), %s2313_s17  ;;  %p61_p11 = scmp.ne.s32.totalorder %s2297_s30, %s2293_s29 }
  0x4d   : > { %p49_p2 = scmp.ge.s32.totalorder %s3132_s22, 2  ;;  %p67_p4 = scmp.ne.s32.totalorder %s2293_s29, %s2289_s28 }
  0x4e   : > { %p3066_p6 = scmp.eq.s32.totalorder %s2317_s18, 0  ;;  %p68_p10 = scmp.eq.s32.totalorder %s2545_s23, 0 }
  0x4f   : > { %s3134_s22 = smov (%p49_p2, %s3132_s22), 0  ;;  %p3070_p13 = scmp.ne.s32.totalorder %s2281_s26, %s2277_s25 }
  0x50   : > { %p2559_p8 = por %p3066_p6, %p61_p11  ;;  %3068 = sst [smem:[#allocation27_spill]] %s3134_s22 }
  0x51   : > { %p2569_p12 = por %p68_p10, %p67_p4  ;;  %p2576_p0 = por %p3070_p13, %p68_p10 }
  0x52   : > { %s51_s7 = ssub.s32 %s2313_s17, %s3134_s22  ;;  %p403_p1 = scmp.eq.s32.totalorder %s2545_s23, 3 }
  0x53   : > { %s3069_s20 = scalar_select %p2569_p12, 1, 0 }
  0x54   : > { %s3071_s6 = scalar_select %p2576_p0, 1, 0 }
  0x55   : > { %p52_p5 = scmp.eq.s32.totalorder %s51_s7, 0  ;;  %p409_p6 = scmp.eq.s32.totalorder %s1699_s10, 3 }
  0x56   : > { %3072 = sst [smem:[#allocation28_spill]] %s3071_s6  ;;  %p2583_p3 = por %p403_p1, %p61_p11 }
  0x57   : > { %s429_s3 = sand.u32 1, %s2297_s30   ;;  %p2594_p2 = por %p409_p6, %p67_p4 }
  0x58   : > { %s3073_s13 = scalar_select %p2583_p3, 1, 0 }
  0x59   : > { %s2589_s4 = scalar_select %p52_p5, %s2297_s30, %s54_s8  }
  0x5a   : > { %s3075_s2 = scalar_select %p2594_p2, 1, 0 }
  0x5b   : > { %3074 = sst [smem:[#allocation29_spill]] %s2589_s4  ;;  %s1702_s25 = sshll.u32 %s429_s3, 5 }
  0x5c   : > { %3076 = sst [smem:[#allocation30_spill]] %s3075_s2  ;;  %s1768_s1 = sshll.u32 %s2313_s17, 9 }
  0x5d   : > { %s3077_s0 = sld [smem:[#allocation31_spill]]  ;;  %s433_s7 = scalar_lea.vmem [#allocation3], %s1702_s25 }
  0x5e   : > { %s441_s10 = sshll.u32 %s433_s7, 4  ;;  %p3078_p11 = scmp.lt.s32.totalorder %s2317_s18, 4  ;;  %s2612_s10 = int_to_ptr.vmem [resolvable:$true] %s441_s10 }
  0x5f   : > { %s2614_s17 = scalar_lea.sflag [#allocation4], %s429_s3 }
  0x60   : > { %p2608_p10 = pnand %p3078_p11, %p2559_p8 }
  0x62   : > { %p2099_p13 = pneg %p2608_p10 }
  0x63   : > { %s2602_s22 = scalar_lea.hbm %s3077_s0, %s1768_s1  ;;  %s2102_s6 = scalar_lea.hbm %s3077_s0, 1024 }
  0x64   : > { %s2097_s1 = scalar_lea.hbm %s2602_s22, 512  ;;  %p2103_p8 = scmp.lt.u32.totalorder %s2602_s22, %s3077_s0 }
  0x65   : > { %p2098_p4 = scmp.ne.s32.totalorder %s2602_s22, %s2097_s1  ;;  %p2104_p6 = scmp.lt.u32.totalorder %s2102_s6, %s2097_s1 }
  0x66   : > { %p2106_p2 = scmp.lt.u32.totalorder %s2097_s1, %s2602_s22 }
  0x67   : > { %p2100_p1 = pnand %p2099_p13, %p2098_p4  ;;  %p2105_p11 = por %p2104_p6, %p2103_p8 }
  0x69   : > { %p2101_p5 = pneg %p2100_p1  ;;  %p2107_p3 = por %p2106_p2, %p2105_p11 }
  0x6b   : > { %p2108_p0 = pnand %p2107_p3, %p2101_p5 }
  0x6d   : > { %2111 = shalt.err (!%p2108_p0)
}
  0x6e   : > { %s2112_s3 = scalar_lea.vmem %s2612_s10, 512  ;;  %s2322_s14 = smov [#allocation3]  }
  0x6f   : > { %p2113_p4 = scmp.ne.s32.totalorder %s2612_s10, %s2112_s3  ;;  %s2117_s19 = sshll.u32 %s2322_s14, 4  ;;  %s2118_s19 = int_to_ptr.vmem [resolvable:$false] %s2117_s19 }
  0x70   : > { %s2119_s25 = scalar_lea.vmem %s2118_s19, 1024  ;;  %p2120_p7 = scmp.lt.s32.totalorder %s2612_s10, %s2118_s19 }
  0x71   : > { %p2115_p1 = pnand %p2113_p4, %p2099_p13  ;;  %p2121_p8 = scmp.lt.s32.totalorder %s2119_s25, %s2112_s3 }
  0x73   : > { %p2116_p12 = pneg %p2115_p1  ;;  %p2122_p6 = por %p2121_p8, %p2120_p7 }
  0x75   : > { %p2123_p2 = pnand %p2122_p6, %p2116_p12 }
  0x77   : > { %2126 = shalt.err (!%p2123_p2)
}
  0x78   : > { %s2323_s1 = smov 128   ;;  %s2324_s6 = smov 8  }
  0x79   : > { %1895 = dma.hbm_to_vmem [thread:$0]  (!%p2608_p10), %s2602_s22, 512, %s2612_s10, %s2614_s17, %s2323_s1, %s2323_s1, %s2324_s6  }
  0x7a   : > { %s3080_s5 = sld [smem:[#allocation36_spill]]  ;;  %s494_s3 = scalar_lea.vmem [#allocation8], %s2485_s15 }
  0x7b   : > { %s501_s19 = sshll.u32 %s494_s3, 4  ;;  %s2649_s19 = int_to_ptr.vmem [resolvable:$true] %s501_s19 }
  0x80   : > { %s2646_s0 = scalar_lea.hbm %s3080_s5, %s2488_s12  ;;  %s2132_s22 = scalar_lea.hbm %s3080_s5, 2048 }
  0x81   : > { %s2127_s25 = scalar_lea.hbm %s2646_s0, 1024  ;;  %p2133_p0 = scmp.lt.u32.totalorder %s2646_s0, %s3080_s5 }
  0x82   : > { %p2128_p7 = scmp.ne.s32.totalorder %s2646_s0, %s2127_s25  ;;  %p2134_p10 = scmp.lt.u32.totalorder %s2132_s22, %s2127_s25 }
  0x83   : > { %p2136_p5 = scmp.lt.u32.totalorder %s2127_s25, %s2646_s0 }
  0x84   : > { %p2130_p3 = pnand %p2128_p7, %p2511_p9  ;;  %p2135_p13 = por %p2134_p10, %p2133_p0 }
  0x86   : > { %p2131_p12 = pneg %p2130_p3  ;;  %p2137_p11 = por %p2136_p5, %p2135_p13 }
  0x88   : > { %p2138_p4 = pnand %p2137_p11, %p2131_p12 }
  0x8a   : > { %2141 = shalt.err (!%p2138_p4)
}
  0x8b   : > { %s2142_s6 = scalar_lea.vmem %s2649_s19, 1024  ;;  %s2325_s7 = smov [#allocation8]  }
  0x8c   : > { %p2143_p1 = scmp.ne.s32.totalorder %s2649_s19, %s2142_s6  ;;  %s2147_s14 = sshll.u32 %s2325_s7, 4  ;;  %s2148_s14 = int_to_ptr.vmem [resolvable:$false] %s2147_s14 }
  0x8d   : > { %s2149_s3 = scalar_lea.vmem %s2148_s14, 2048  ;;  %p2150_p2 = scmp.lt.s32.totalorder %s2649_s19, %s2148_s14 }
  0x8e   : > { %p2145_p8 = pnand %p2143_p1, %p2511_p9  ;;  %p2151_p7 = scmp.lt.s32.totalorder %s2149_s3, %s2142_s6 }
  0x90   : > { %p2146_p6 = pneg %p2145_p8  ;;  %p2152_p3 = por %p2151_p7, %p2150_p2 }
  0x92   : > { %p2153_p0 = pnand %p2152_p3, %p2146_p6 }
  0x94   : > { %2156 = shalt.err (!%p2153_p0)
}
  0x95   : > { %p3081_p12 = scmp.ne.s32.totalorder %s3062_s21, 0  ;;  %s3082_s25 = smov 4  }
  0x96   : > { %s3083_s8 = smov 64   ;;  %s3084_s11 = sld [smem:[#allocation42_spill]] }
  0x97   : > { %1901 = dma.hbm_to_vmem [thread:$0]  (!%p3081_p12), %s2646_s0, 1024, %s2649_s19, %s2505_s24, %s3083_s8, %s3083_s8, %s3082_s25  }
  0x98   : > { %s549_s1 = scalar_lea.vmem [#allocation9], %s2485_s15  ;;  %s3085_s7 = sand.u32 1, %s2285_s27  }
  0x99   : > { %s556_s6 = sshll.u32 %s549_s1, 4  ;;  %s2687_s14 = scalar_lea.sflag [#allocation10], %s3085_s7  ;;  %s2683_s6 = int_to_ptr.vmem [resolvable:$true] %s556_s6 }
  0x9c   : > { %s2680_s10 = scalar_lea.hbm %s3084_s11, %s2488_s12  ;;  %s2162_s12 = scalar_lea.hbm %s3084_s11, 2048 }
  0x9d   : > { %s2157_s3 = scalar_lea.hbm %s2680_s10, 1024  ;;  %p2163_p11 = scmp.lt.u32.totalorder %s2680_s10, %s3084_s11 }
  0x9e   : > { %p2158_p10 = scmp.ne.s32.totalorder %s2680_s10, %s2157_s3  ;;  %p2164_p4 = scmp.lt.u32.totalorder %s2162_s12, %s2157_s3 }
  0x9f   : > { %p2166_p8 = scmp.lt.u32.totalorder %s2157_s3, %s2680_s10 }
  0xa0   : > { %p2160_p13 = pnand %p2158_p10, %p2511_p9  ;;  %p2165_p1 = por %p2164_p4, %p2163_p11 }
  0xa2   : > { %p2161_p5 = pneg %p2160_p13  ;;  %p2167_p6 = por %p2166_p8, %p2165_p1 }
  0xa4   : > { %p2168_p2 = pnand %p2167_p6, %p2161_p5 }
  0xa6   : > { %2171 = shalt.err (!%p2168_p2)
}
  0xa7   : > { %s2172_s15 = scalar_lea.vmem %s2683_s6, 1024  ;;  %s2326_s22 = smov [#allocation9]  }
  0xa8   : > { %p2173_p7 = scmp.ne.s32.totalorder %s2683_s6, %s2172_s15  ;;  %s2177_s1 = sshll.u32 %s2326_s22, 4  ;;  %s2178_s1 = int_to_ptr.vmem [resolvable:$false] %s2177_s1 }
  0xa9   : > { %s2179_s7 = scalar_lea.vmem %s2178_s1, 2048  ;;  %p2180_p10 = scmp.lt.s32.totalorder %s2683_s6, %s2178_s1 }
  0xaa   : > { %p2175_p3 = pnand %p2173_p7, %p2511_p9  ;;  %p2181_p13 = scmp.lt.s32.totalorder %s2179_s7, %s2172_s15 }
  0xac   : > { %p2176_p0 = pneg %p2175_p3  ;;  %p2182_p11 = por %p2181_p13, %p2180_p10 }
  0xae   : > { %p2183_p4 = pnand %p2182_p11, %p2176_p0 }
  0xb0   : > { %2186 = shalt.err (!%p2183_p4)
}
  0xb1   : > { %1904 = dma.hbm_to_vmem [thread:$0]  (!%p3081_p12), %s2680_s10, 1024, %s2683_s6, %s2687_s14, %s3083_s8, %s3083_s8, %s3082_s25  }
  0xb2   : > { %p3086_p9 = scmp.ne.s32.totalorder %s3064_s16, 0 }
  0xb3   : > { %s2717_s9 = sand.u32 (!%p3086_p9), 1, %s2293_s29   ;;  %p3087_p5 = scmp.ne.s32.totalorder (!%p3086_p9), %s3069_s20, 0 }
  0xb4   : > { %574 = sbr.rel (%p3086_p9) target bundleno = 1580 (0x62c), region = 72  ;;  %s3028_s3 = sshll.u32 (!%p3086_p9), %s2717_s9, 5 }
  0xb5   : > { %s577_s0 = scalar_lea.sflag (!%p3086_p9), [#allocation4], %s2717_s9  ;;  %s2723_s21 = scalar_lea.vmem (!%p3086_p9), [#allocation3], %s3028_s3 }
  0xbb   : > { %2260 = dma.done.wait (%p3087_p5), %s577_s0, 512  }
  0xbc   : > { %2262 = vsyncadd (%p3087_p5), %s577_s0, 4294966784  ;;  %s3088_s16 = sld [smem:[#allocation28_spill]]  ;;  %s585_s25 = sand.u32 1, %s2545_s23  }
  0xbd   : > { %s587_s8 = sand.u32 1, %s2281_s26   ;;  %s586_s6 = scalar_lea.sflag [#allocation7], %s585_s25 }
  0xbe   : > { %s1717_s10 = sshll.u32 %s587_s8, 6 }
  0xbf   : > { %s2731_s14 = scalar_lea.vmem [#allocation6], %s1717_s10 }
  0xc2   : > { %p3089_p12 = scmp.ne.s32.totalorder %s3088_s16, 0 }
  0xc4   : > { %2264 = dma.done.wait (%p3089_p12), %s586_s6, 2048  }
  0xc5   : > { %2266 = vsyncadd (%p3089_p12), %s586_s6, 4294965248  ;;  %s2737_s24 = scalar_lea.vmem [#allocation8], %s1717_s10  ;;  %s604_s12 = scalar_lea.sflag [#allocation10], %s587_s8 }
  0xc6   : > { %s2739_s20 = scalar_lea.vmem [#allocation9], %s1717_s10 }
  0xc7   : > { %2268 = dma.done.wait (%p3089_p12), %s604_s12, 1024  }
  0xc8   : > { %2270 = vsyncadd (%p3089_p12), %s604_s12, 4294966272  ;;  %s3090_s23 = sld [smem:[#allocation21_spill]]  ;;  %s3094_s17 = sld [smem:[#allocation37_spill]] }
  0xc9   : > { %s3095_s30 = sld [smem:[#allocation38_spill]]  ;;  %s3096_s2 = sld [smem:[#allocation39_spill]] }
  0xca   : > { %s3097_s16 = sld [smem:[#allocation40_spill]]  ;;  %s3098_s6 = sld [smem:[#allocation41_spill]] }
  0xcb   : > { %s3099_s4 = sld [smem:[#allocation43_spill]] }
  0xce   : > { %p697_p1 = scmp.lt.s32.totalorder %s3090_s23, 1  ;;  %p1725_p8 = scmp.ne.s32.totalorder %s3090_s23, 0 }
  0xcf   : > { %v734_v0 = vld [vmem:[%s2723_s21] sm:$0xff] (!%p1725_p8)  ;;  %v735_v1 = vld [vmem:[%s2723_s21 + $0x8] sm:$0xff] (!%p1725_p8)  ;;  %v736_v2 = vld [vmem:[%s2723_s21 + $0x10] sm:$0xff] (!%p1725_p8) }
  0xd0   : > { %s2747_s19 = scalar_select %p697_p1, %s3090_s23, 1 }
  0xd1   : > { %733 = sbr.rel (%p1725_p8) target bundleno = 216 (0xd8), region = 92  ;;  %738 = vst [vmem:[#allocation2] sm:$0xff] (!%p1725_p8), %v734_v0  ;;  %739 = vst [vmem:[#allocation2 + $0x8] sm:$0xff] (!%p1725_p8), %v735_v1  ;;  %v737_v3 = vld [vmem:[%s2723_s21 + $0x18] sm:$0xff] (!%p1725_p8) }
  0xd2   : > { %s708_s15 = scalar_lea.vmem %s3094_s17, %s2747_s19  ;;  %s711_s29 = scalar_lea.vmem %s3095_s30, %s2747_s19  ;;  %740 = vst [vmem:[#allocation2 + $0x10] sm:$0xff] (!%p1725_p8), %v736_v2  ;;  %741 = vst [vmem:[#allocation2 + $0x18] sm:$0xff] (!%p1725_p8), %v737_v3 }
  0xd3   : > { %s714_s22 = scalar_lea.vmem %s3096_s2, %s2747_s19  ;;  %s1772_s1 = sshll.u32 %s2747_s19, 3 }
  0xd4   : > { %s1773_s28 = sshll.u32 %s2747_s19, 4  ;;  %s2778_s25 = scalar_lea.vmem %s3097_s16, %s1772_s1 }
  0xd5   : > { %s2783_s5 = scalar_lea.vmem %s3098_s6, %s1773_s28  ;;  %s727_s11 = scalar_lea.vmem %s3099_s4, %s2747_s19 }
  0xd6   : > { %s3100_s30 = sshll.u32 %s2717_s9, 5 }
  0xd7   : > { %s2791_s12 = scalar_lea.vmem [#allocation11], %s3100_s30 }
  0xd8 PF: > { %v2798_v4 = vld [vmem:[#allocation2] sm:$0xff]  ;;  %v2802_v6 = vld [vmem:[#allocation2 + $0x8] sm:$0xff]  ;;  %v2014_v28 = vld [vmem:[%s2731_s14 + $0x10] sm:$0xff]   ;;  %s3101_s27 = sld [smem:[#allocation32_spill]]  ;;  %vm2328_vm0 = vmmov 0   ;;  %vm1214_vm1 = vcmask 130048  }
  0xd9   : > { %v2800_v5 = vld [vmem:[#allocation2 + $0x10] sm:$0xff]  ;;  %748 = vadd.xlane.f32.xlu0 %v2798_v4  ;;  %v2806_v7 = vld [vmem:[#allocation2 + $0x18] sm:$0xff]  ;;  %v2010_v8 = vld [vmem:[%s2731_s14] sm:$0xff]  }
  0xda   : > { %752 = vadd.xlane.f32.xlu1 %v2800_v5  ;;  %v2011_v9 = vld [vmem:[%s2737_s24] sm:$0xff]   ;;  %1810 = vmatprep.subr.bf16.mxu0 %v2010_v8  ;;  %v2012_v26 = vld [vmem:[%s2731_s14 + $0x8] sm:$0xff]   ;;  %v2015_v29 = vld [vmem:[%s2737_s24 + $0x10] sm:$0xff]  }
  0xdb   : > { %1830 = vmatprep.subr.bf16.mxu1 %v2011_v9  ;;  %1811 = vmatpush3.bf16.msra.mxu0 %v2010_v8  ;;  %v2013_v27 = vld [vmem:[%s2737_s24 + $0x8] sm:$0xff]   ;;  %v2016_v30 = vld [vmem:[%s2731_s14 + $0x18] sm:$0xff]   ;;  %v2018_v32 = vld [vmem:[%s2731_s14 + $0x20] sm:$0xff]  }
  0xdc   : > { %1831 = vmatpush3.bf16.msra.mxu1 %v2011_v9  ;;  %1812 = vmatprep.subr.bf16.mxu0 %v2012_v26  ;;  %v2017_v31 = vld [vmem:[%s2737_s24 + $0x18] sm:$0xff]   ;;  %v2019_v33 = vld [vmem:[%s2737_s24 + $0x20] sm:$0xff]   ;;  %v2020_v34 = vld [vmem:[%s2731_s14 + $0x28] sm:$0xff]  }
  0xdd   : > { %750 = vadd.xlane.f32.xlu0 %v2802_v6  ;;  %1832 = vmatprep.subr.bf16.mxu1 %v2013_v27  ;;  %v2021_v35 = vld [vmem:[%s2737_s24 + $0x28] sm:$0xff]   ;;  %v2022_v36 = vld [vmem:[%s2731_s14 + $0x30] sm:$0xff]   ;;  %v2024_v38 = vld [vmem:[%s2731_s14 + $0x38] sm:$0xff]  }
  0xde   : > { %754 = vadd.xlane.f32.xlu1 %v2806_v7  ;;  %v2023_v37 = vld [vmem:[%s2737_s24 + $0x30] sm:$0xff]   ;;  %v2025_v39 = vld [vmem:[%s2737_s24 + $0x38] sm:$0xff]   ;;  %s3102_s28 = scalar_lea.vmem %s3101_s27, %s2747_s19  ;;  %s3103_s24 = sld [smem:[#allocation33_spill]] }
  0xdf   : > { %1813 = vmatpush3.bf16.msra.mxu0 %v2012_v26  ;;  %v1726_v54 = vld [vmem:[%s3102_s28] ss:$0 sm:$0xff] }
  0xe0   : > { %1833 = vmatpush3.bf16.msra.mxu1 %v2013_v27  ;;  %1814 = vmatprep.subr.bf16.mxu0 %v2014_v28 }
  0xe1   : > { %1834 = vmatprep.subr.bf16.mxu1 %v2015_v29 }
  0xe3   : > { %1815 = vmatpush3.bf16.msra.mxu0 %v2014_v28 }
  0xe4   : > { %1835 = vmatpush3.bf16.msra.mxu1 %v2015_v29  ;;  %1816 = vmatprep.subr.bf16.mxu0 %v2016_v30  ;;  %s3104_s23 = scalar_lea.vmem %s3103_s24, %s2747_s19 }
  0xe5   : > { %1836 = vmatprep.subr.bf16.mxu1 %v2017_v31  ;;  %v1727_v59 = vld [vmem:[%s3104_s23] ss:$0 sm:$0xff] }
  0xe7   : > { %1817 = vmatpush3.bf16.msra.mxu0 %v2016_v30 }
  0xe8   : > { %1837 = vmatpush3.bf16.msra.mxu1 %v2017_v31  ;;  %1818 = vmatprep.subr.bf16.mxu0 %v2018_v32 }
  0xe9   : > { %1838 = vmatprep.subr.bf16.mxu1 %v2019_v33 }
  0xeb   : > { %1819 = vmatpush3.bf16.msra.mxu0 %v2018_v32 }
  0xec   : > { %1839 = vmatpush3.bf16.msra.mxu1 %v2019_v33  ;;  %1820 = vmatprep.subr.bf16.mxu0 %v2020_v34 }
  0xed   : > { %1840 = vmatprep.subr.bf16.mxu1 %v2021_v35 }
  0xef   : > { %1821 = vmatpush3.bf16.msra.mxu0 %v2020_v34 }
  0xf0   : > { %1841 = vmatpush3.bf16.msra.mxu1 %v2021_v35  ;;  %1822 = vmatprep.subr.bf16.mxu0 %v2022_v36 }
  0xf1   : > { %1842 = vmatprep.subr.bf16.mxu1 %v2023_v37 }
  0xf3   : > { %1823 = vmatpush3.bf16.msra.mxu0 %v2022_v36 }
  0xf4   : > { %1843 = vmatpush3.bf16.msra.mxu1 %v2023_v37  ;;  %1824 = vmatprep.subr.bf16.mxu0 %v2024_v38 }
  0xf5   : > { %1844 = vmatprep.subr.bf16.mxu1 %v2025_v39 }
  0xf7   : > { %1825 = vmatpush3.bf16.msra.mxu0 %v2024_v38 }
  0xf8   : > { %1845 = vmatpush3.bf16.msra.mxu1 %v2025_v39 }
 0x166   : > { %v749_v10 = vpop.xlane.xlu0 %748 }
 0x167   : > { %v753_v11 = vpop.xlane.xlu1 %752  ;;  %v757_v12 = vmul.f32 0.0078125, %v749_v10 }
 0x168   : > { %v759_v13 = vmul.f32 0.0078125, %v753_v11 }
 0x169   : > { %v2813_v14 = vsub.f32 %v2798_v4, %v757_v12  ;;  %v1737_v12 = vld [vmem:[%s708_s15] ss:$0 sm:$0xff] }
 0x16a   : > { %v2816_v15 = vsub.f32 %v2800_v5, %v759_v13  ;;  %v751_v16 = vpop.xlane.xlu0 %750 }
 0x16b   : > { %v755_v17 = vpop.xlane.xlu1 %754  ;;  %v758_v18 = vmul.f32 0.0078125, %v751_v16  ;;  %v765_v19 = vmul.f32 %v2813_v14, %v2813_v14 }
 0x16c   : > { %v760_v20 = vmul.f32 0.0078125, %v755_v17  ;;  %v767_v23 = vmul.f32 %v2816_v15, %v2816_v15 }
 0x16d   : > { %v2821_v21 = vsub.f32 %v2802_v6, %v758_v18  ;;  %769 = vadd.xlane.f32.xlu0 %v765_v19 }
 0x16e   : > { %v2824_v22 = vsub.f32 %v2806_v7, %v760_v20 }
 0x16f   : > { %v766_v24 = vmul.f32 %v2821_v21, %v2821_v21 }
 0x170   : > { %v768_v25 = vmul.f32 %v2824_v22, %v2824_v22 }
 0x171   : > { %773 = vadd.xlane.f32.xlu0 %v767_v23  ;;  %771 = vadd.xlane.f32.xlu1 %v766_v24 }
 0x175   : > { %775 = vadd.xlane.f32.xlu1 %v768_v25 }
 0x1fa   : > { %v770_v40 = vpop.xlane.xlu0 %769 }
 0x1fb   : > { %v777_v41 = vmul.f32 0.0078125, %v770_v40 }
 0x1fd   : > { %v781_v42 = vadd.f32 1e-05, %v777_v41 }
 0x1fe   : > { %v772_v43 = vpop.xlane.xlu1 %771  ;;  %v774_v44 = vpop.xlane.xlu0 %773 }
 0x1ff   : > { %2035 = vrsqrt.f32 %v781_v42  ;;  %v778_v45 = vmul.f32 0.0078125, %v772_v43  ;;  %v779_v46 = vmul.f32 0.0078125, %v774_v44 }
 0x201   : > { %v782_v47 = vadd.f32 1e-05, %v778_v45  ;;  %v783_v48 = vadd.f32 1e-05, %v779_v46 }
 0x202   : > { %v776_v49 = vpop.xlane.xlu1 %775 }
 0x203   : > { %2037 = vrsqrt.f32 %v782_v47  ;;  %v780_v50 = vmul.f32 0.0078125, %v776_v49 }
 0x204   : > { %2039 = vrsqrt.f32 %v783_v48 }
 0x205   : > { %v784_v51 = vadd.f32 1e-05, %v780_v50 }
 0x207   : > { %2041 = vrsqrt.f32 %v784_v51 }
 0x209   : > { %v2036_v52 = vpop.eup %2035 }
 0x20a   : > { %v789_v53 = vmul.f32 %v2036_v52, %v2813_v14 }
 0x20c   : > { %v799_v58 = vmul.f32 %v1726_v54, %v789_v53 }
 0x20d   : > { %v2038_v55 = vpop.eup %2037 }
 0x20e   : > { %v2040_v56 = vpop.eup %2039  ;;  %v790_v57 = vmul.f32 %v2038_v55, %v2821_v21  ;;  %v809_v63 = vadd.f32 %v1727_v59, %v799_v58 }
 0x20f   : > { %v791_v60 = vmul.f32 %v2040_v56, %v2816_v15 }
 0x210   : > { %v800_v61 = vmul.f32 %v1726_v54, %v790_v57 }
 0x211   : > { %v2042_v62 = vpop.eup %2041  ;;  %v801_v2 = vmul.f32 %v1726_v54, %v791_v60 }
 0x212   : > { %v810_v0 = vadd.f32 %v1727_v59, %v800_v61  ;;  %v792_v1 = vmul.f32 %v2042_v62, %v2824_v22 }
 0x213   : > { %v811_v9 = vadd.f32 %v1727_v59, %v801_v2 }
 0x214   : > { %v813_v3 = vpack.c.bf16 %v810_v0, %v809_v63  ;;  %v802_v8 = vmul.f32 %v1726_v54, %v792_v1 }
 0x216   : > { %1826 = vmatprep.mubr.bf16.mxu0 %v813_v3  ;;  %1846 = vmatprep.mubr.bf16.mxu1 %v813_v3  ;;  %v812_v10 = vadd.f32 %v1727_v59, %v802_v8 }
 0x218   : > { %v814_v11 = vpack.c.bf16 %v812_v10, %v811_v9 }
 0x21a   : > { %1827 = vmatmul.mubr.bf16.vlgmr.msra.gmra.mrb[0].mxu0 %v814_v11  ;;  %1847 = vmatmul.mubr.bf16.vlgmr.msra.gmra.mrb[0].mxu1 %v814_v11 }
 0x2ed   : > { %v2865_v13 = vpop.f32.mrb[0].mxu0  ;;  %v1848_v14 = vpop.f32.mrb[0].mxu1 }
 0x2ee   : > { %v1085_v15 = vadd.f32 %v1848_v14, %v1737_v12  ;;  %v2867_v16 = vpop.f32.mrb[1].mxu0  ;;  %v1076_v17 = vpop.f32.mrb[1].mxu1 }
 0x2ef   : > { %v1077_v18 = vadd.f32 %v1737_v12, %v1076_v17  ;;  %v2869_v19 = vpop.f32.mrb[2].mxu0  ;;  %v1849_v20 = vpop.f32.mrb[2].mxu1 }
 0x2f0   : > { %v1097_v21 = vmul.f32 0.044715, %v1085_v15  ;;  %v1088_v22 = vadd.f32 %v1849_v20, %v1737_v12  ;;  %v2871_v23 = vpop.f32.mrb[3].mxu0  ;;  %v1079_v24 = vpop.f32.mrb[3].mxu1  ;;  %v1093_v56 = vmul.f32 0.5, %v1085_v15  ;;  %v2327_v20 = vmov 0.0  }
 0x2f1   : > { %v1095_v25 = vmul.f32 0.044715, %v1077_v18  ;;  %v1080_v26 = vadd.f32 %v1737_v12, %v1079_v24  ;;  %v1091_v47 = vmul.f32 0.5, %v1077_v18  ;;  %1850 = vmatprep.subr.bf16.mxu1 %v2327_v20  ;;  %1852 = vmatprep.mubr.msk.bf16.mxu1 %vm2328_vm0, %v2327_v20  ;;  %v2027_v24 = vld [vmem:[%s2739_s20] sm:$0xff]  }
 0x2f2   : > { %v1098_v27 = vmul.f32 0.044715, %v1088_v22  ;;  %v1101_v30 = vmul.f32 %v1097_v21, %v1085_v15  ;;  %v1094_v59 = vmul.f32 0.5, %v1088_v22  ;;  %v1197_v21 = vld [vmem:[%s2783_s5] sm:$0xff]  ;;  %1862 = vmatprep.subr.bf16.mxu0 %v2027_v24 }
 0x2f3   : > { %v1096_v28 = vmul.f32 0.044715, %v1080_v26  ;;  %v1099_v29 = vmul.f32 %v1095_v25, %v1077_v18  ;;  %v1092_v52 = vmul.f32 0.5, %v1080_v26  ;;  %v2329_v25 = vmov 0   ;;  %1863 = vmatpush3.bf16.msra.mxu0 %v2027_v24 }
 0x2f4   : > { %v1105_v33 = vmul.f32 %v1101_v30, %v1085_v15  ;;  %v1102_v34 = vmul.f32 %v1098_v27, %v1088_v22  ;;  %2008 = vset.pattern.permute.xlu0 %v2329_v25  ;;  %2009 = vset.pattern.permute.xlu1 %v2329_v25  ;;  %v2029_v27 = vld [vmem:[%s2739_s20 + $0x10] sm:$0xff]  }
 0x2f5   : > { %v1103_v31 = vmul.f32 %v1099_v29, %v1077_v18  ;;  %v1100_v32 = vmul.f32 %v1096_v28, %v1080_v26  ;;  %v2030_v28 = vld [vmem:[%s2739_s20 + $0x18] sm:$0xff]  }
 0x2f6   : > { %v1109_v37 = vadd.f32 %v1105_v33, %v1085_v15  ;;  %v1106_v38 = vmul.f32 %v1102_v34, %v1088_v22 }
 0x2f7   : > { %v1107_v35 = vadd.f32 %v1103_v31, %v1077_v18  ;;  %v1104_v36 = vmul.f32 %v1100_v32, %v1080_v26 }
 0x2f8   : > { %v1113_v41 = vmul.f32 0.7978846, %v1109_v37  ;;  %v1110_v42 = vadd.f32 %v1106_v38, %v1088_v22  ;;  %v1198_v22 = vld [vmem:[%s2783_s5 + $0x8] sm:$0xff] }
 0x2f9   : > { %v1111_v39 = vmul.f32 0.7978846, %v1107_v35  ;;  %v1108_v40 = vadd.f32 %v1104_v36, %v1080_v26  ;;  %v2028_v26 = vld [vmem:[%s2739_s20 + $0x8] sm:$0xff]  }
 0x2fa   : > { %v1114_v44 = vmul.f32 0.7978846, %v1110_v42  ;;  %1864 = vmatprep.subr.bf16.mxu0 %v2028_v26  ;;  %v1746_v42 = vld [vmem:[%s711_s29] ss:$0 sm:$0xff] }
 0x2fb   : > { %2043 = vtanh.f32 %v1111_v39  ;;  %v1112_v43 = vmul.f32 0.7978846, %v1108_v40  ;;  %1865 = vmatpush3.bf16.msra.mxu0 %v2028_v26 }
 0x2fc   : > { %2045 = vtanh.f32 %v1113_v41  ;;  %1866 = vmatprep.subr.bf16.mxu0 %v2029_v27 }
 0x2fd   : > { %2047 = vtanh.f32 %v1112_v43 }
 0x2fe   : > { %2049 = vtanh.f32 %v1114_v44 }
 0x2ff   : > { %1867 = vmatpush3.bf16.msra.mxu0 %v2029_v27 }
 0x300   : > { %1868 = vmatprep.subr.bf16.mxu0 %v2030_v28 }
 0x303   : > { %1869 = vmatpush3.bf16.msra.mxu0 %v2030_v28 }
 0x305   : > { %v2044_v45 = vpop.eup %2043 }
 0x306   : > { %v2046_v46 = vpop.eup %2045  ;;  %v1119_v48 = vadd.f32 1.0, %v2044_v45 }
 0x307   : > { %v2048_v49 = vpop.eup %2047  ;;  %v1121_v54 = vadd.f32 1.0, %v2046_v46 }
 0x308   : > { %v2050_v50 = vpop.eup %2049  ;;  %v1123_v51 = vmul.f32 %v1119_v48, %v1091_v47  ;;  %v1120_v53 = vadd.f32 1.0, %v2048_v49  ;;  %v1747_v48 = vld [vmem:[%s714_s22] ss:$0 sm:$0xff]  ;;  %s3108_s22 = sld [smem:[#allocation35_spill]] }
 0x309   : > { %v1122_v57 = vadd.f32 1.0, %v2050_v50  ;;  %v1125_v58 = vmul.f32 %v1121_v54, %v1093_v56 }
 0x30a   : > { %1129 = vadd.xlane.f32.xlu0 %v1123_v51  ;;  %v1124_v55 = vmul.f32 %v1120_v53, %v1092_v52 }
 0x30b   : > { %v1126_v60 = vmul.f32 %v1122_v57, %v1094_v59 }
 0x30c   : > { %1131 = vadd.xlane.f32.xlu1 %v1124_v55 }
 0x30e   : > { %1133 = vadd.xlane.f32.xlu0 %v1125_v58  ;;  %s3109_s3 = scalar_lea.vmem %s3108_s22, %s2747_s19  ;;  %s3111_s19 = sld [smem:[#allocation21_spill]] }
 0x310   : > { %1135 = vadd.xlane.f32.xlu1 %v1126_v60 }
 0x314   : > { %p1760_p6 = scmp.ne.s32.totalorder %s3111_s19, 1 }
 0x397   : > { %v1130_v61 = vpop.xlane.xlu0 %1129 }
 0x398   : > { %v1137_v62 = vmul.f32 0.0078125, %v1130_v61 }
 0x399   : > { %v1132_v63 = vpop.xlane.xlu1 %1131 }
 0x39a   : > { %v1141_v0 = vsub.f32 %v1123_v51, %v1137_v62  ;;  %v1138_v1 = vmul.f32 0.0078125, %v1132_v63  ;;  %v2031_v62 = vld [vmem:[%s2739_s20 + $0x20] sm:$0xff]   ;;  %v2032_v63 = vld [vmem:[%s2739_s20 + $0x28] sm:$0xff]  }
 0x39b   : > { %v1134_v2 = vpop.xlane.xlu0 %1133  ;;  %1870 = vmatprep.subr.bf16.mxu0 %v2031_v62 }
 0x39c   : > { %v1142_v3 = vsub.f32 %v1124_v55, %v1138_v1  ;;  %v1139_v8 = vmul.f32 0.0078125, %v1134_v2  ;;  %v1145_v9 = vmul.f32 %v1141_v0, %v1141_v0  ;;  %1871 = vmatpush3.bf16.msra.mxu0 %v2031_v62  ;;  %v2034_v1 = vld [vmem:[%s2739_s20 + $0x38] sm:$0xff]   ;;  %v1728_v2 = vld [vmem:[%s3109_s3] ss:$0 sm:$0xff] }
 0x39d   : > { %v1136_v10 = vpop.xlane.xlu1 %1135  ;;  %1872 = vmatprep.subr.bf16.mxu0 %v2032_v63 }
 0x39e   : > { %v1143_v11 = vsub.f32 %v1125_v58, %v1139_v8  ;;  %v1140_v12 = vmul.f32 0.0078125, %v1136_v10  ;;  %1149 = vadd.xlane.f32.xlu0 %v1145_v9  ;;  %v1146_v14 = vmul.f32 %v1142_v3, %v1142_v3  ;;  %v2026_v58 = vld [vmem:[%s2778_s25] sm:$0xff]   ;;  %v924_v8 = vadd.f32 %v1728_v2, %v2871_v23 }
 0x3a0   : > { %v1144_v15 = vsub.f32 %v1126_v60, %v1140_v12  ;;  %1151 = vadd.xlane.f32.xlu1 %v1146_v14  ;;  %v1147_v17 = vmul.f32 %v1143_v11, %v1143_v11  ;;  %1873 = vmatpush3.bf16.msra.mxu0 %v2032_v63  ;;  %v940_v10 = vmul.f32 0.044715, %v924_v8  ;;  %v932_v14 = vadd.f32 %v2869_v19, %v1728_v2 }
 0x3a2   : > { %1153 = vadd.xlane.f32.xlu0 %v1147_v17  ;;  %v1148_v18 = vmul.f32 %v1144_v15, %v1144_v15 }
 0x3a4   : > { %1155 = vadd.xlane.f32.xlu1 %v1148_v18 }
 0x3b5   : > { %1206 = vperm.xlu1 %2009, %v1198_v22  }
 0x3b8   : > { %1201 = vperm.xlu0 %2008, %v1197_v21  }
 0x42b   : > { %v1150_v29 = vpop.xlane.xlu0 %1149 }
 0x42c   : > { %v1157_v30 = vmul.f32 0.0078125, %v1150_v29 }
 0x42d   : > { %v1152_v31 = vpop.xlane.xlu1 %1151 }
 0x42e   : > { %v1161_v32 = vadd.f32 1e-05, %v1157_v30  ;;  %v1158_v33 = vmul.f32 0.0078125, %v1152_v31 }
 0x42f   : > { %v1154_v34 = vpop.xlane.xlu0 %1153 }
 0x430   : > { %2051 = vrsqrt.f32 %v1161_v32  ;;  %v1162_v35 = vadd.f32 1e-05, %v1158_v33  ;;  %v1159_v36 = vmul.f32 0.0078125, %v1154_v34 }
 0x431   : > { %v1156_v37 = vpop.xlane.xlu1 %1155 }
 0x432   : > { %2053 = vrsqrt.f32 %v1162_v35  ;;  %v1163_v38 = vadd.f32 1e-05, %v1159_v36  ;;  %v1160_v39 = vmul.f32 0.0078125, %v1156_v37 }
 0x434   : > { %2055 = vrsqrt.f32 %v1163_v38  ;;  %v1164_v40 = vadd.f32 1e-05, %v1160_v39 }
 0x435   : > { %v1207_v38 = vpop.permute.xlu1 %1206 }
 0x436   : > { %2057 = vrsqrt.f32 %v1164_v40 }
 0x437   : > { %v1202_v34 = vpop.permute.xlu0 %1201 }
 0x43a   : > { %v2052_v41 = vpop.eup %2051 }
 0x43b   : > { %v1169_v43 = vmul.f32 %v2052_v41, %v1141_v0  ;;  %v2033_v0 = vld [vmem:[%s2739_s20 + $0x30] sm:$0xff]  }
 0x43c   : > { %v2054_v44 = vpop.eup %2053  ;;  %1874 = vmatprep.subr.bf16.mxu0 %v2033_v0 }
 0x43d   : > { %v1170_v45 = vmul.f32 %v2054_v44, %v1142_v3  ;;  %v1179_v46 = vmul.f32 %v1746_v42, %v1169_v43  ;;  %1875 = vmatpush3.bf16.msra.mxu0 %v2033_v0  ;;  %v921_v3 = vadd.f32 %v1728_v2, %v2867_v16 }
 0x43e   : > { %v2056_v47 = vpop.eup %2055  ;;  %1876 = vmatprep.subr.bf16.mxu0 %v2034_v1 }
 0x43f   : > { %v1171_v49 = vmul.f32 %v2056_v47, %v1143_v11  ;;  %v1180_v50 = vmul.f32 %v1746_v42, %v1170_v45  ;;  %v1189_v53 = vadd.f32 %v1747_v48, %v1179_v46  ;;  %v939_v9 = vmul.f32 0.044715, %v921_v3 }
 0x440   : > { %v2058_v51 = vpop.eup %2057  ;;  %v929_v11 = vadd.f32 %v2865_v13, %v1728_v2  ;;  %v935_v35 = vmul.f32 0.5, %v921_v3 }
 0x441   : > { %v1172_v52 = vmul.f32 %v2058_v51, %v1144_v15  ;;  %v1190_v54 = vadd.f32 %v1747_v48, %v1180_v50  ;;  %v1181_v55 = vmul.f32 %v1746_v42, %v1171_v49  ;;  %1877 = vmatpush3.bf16.msra.mxu0 %v2034_v1  ;;  %v943_v12 = vmul.f32 %v939_v9, %v921_v3 }
 0x442   : > { %v944_v15 = vmul.f32 %v940_v10, %v924_v8  ;;  %v941_v17 = vmul.f32 0.044715, %v929_v11 }
 0x443   : > { %v1193_v56 = vpack.c.bf16 %v1190_v54, %v1189_v53  ;;  %v1182_v57 = vmul.f32 %v1746_v42, %v1172_v52  ;;  %v1191_v59 = vadd.f32 %v1747_v48, %v1181_v55  ;;  %v947_v18 = vmul.f32 %v943_v12, %v921_v3 }
 0x444   : > { %v948_v21 = vmul.f32 %v944_v15, %v924_v8  ;;  %v945_v22 = vmul.f32 %v941_v17, %v929_v11  ;;  %v936_v42 = vmul.f32 0.5, %v924_v8  ;;  %v937_v52 = vmul.f32 0.5, %v929_v11 }
 0x445   : > { %1851 = vmatpush3.bf16.msra.mxu1 %v1193_v56  ;;  %v1192_v60 = vadd.f32 %v1747_v48, %v1182_v57  ;;  %v951_v24 = vadd.f32 %v947_v18, %v921_v3  ;;  %v1751_v3 = vld [vmem:[%s727_s11] ss:$0 sm:$0xff] }
 0x446   : > { %1856 = vmatprep.subr.bf16.mxu1 %v2327_v20  ;;  %v952_v26 = vadd.f32 %v948_v21, %v924_v8  ;;  %v949_v16 = vmul.f32 %v945_v22, %v929_v11 }
 0x447   : > { %v1194_v61 = vpack.c.bf16 %v1192_v60, %v1191_v59  ;;  %v955_v27 = vmul.f32 0.7978846, %v951_v24  ;;  %v938_v59 = vmul.f32 0.5, %v932_v14 }
 0x448   : > { %1853 = vmatmul.mubr.msk.bf16.vlgmr.msra.gmra.mrb[4].mxu1 %vm1214_vm1, %v2026_v58  ;;  %v956_v28 = vmul.f32 0.7978846, %v952_v26  ;;  %v953_v29 = vadd.f32 %v949_v16, %v929_v11 }
 0x449   : > { %1857 = vmatpush3.bf16.msra.mxu1 %v1194_v61  ;;  %1858 = vmatprep.mubr.msk.bf16.mxu1 %vm2328_vm0, %v2327_v20  ;;  %v942_v20 = vmul.f32 0.044715, %v932_v14  ;;  %2059 = vtanh.f32 %v955_v27 }
 0x44a   : > { %2061 = vtanh.f32 %v956_v28  ;;  %v957_v30 = vmul.f32 0.7978846, %v953_v29 }
 0x44b   : > { %v946_v25 = vmul.f32 %v942_v20, %v932_v14 }
 0x44c   : > { %2063 = vtanh.f32 %v957_v30 }
 0x44d   : > { %v950_v23 = vmul.f32 %v946_v25, %v932_v14 }
 0x44f   : > { %v954_v13 = vadd.f32 %v950_v23, %v932_v14 }
 0x450   : > { %1859 = vmatmul.mubr.msk.bf16.vlgmr.msra.gmra.mrb[8].mxu1 %vm1214_vm1, %v2026_v58 }
 0x451   : > { %v958_v31 = vmul.f32 0.7978846, %v954_v13 }
 0x453   : > { %v2060_v19 = vpop.eup %2059  ;;  %2065 = vtanh.f32 %v958_v31 }
 0x454   : > { %v2062_v32 = vpop.eup %2061  ;;  %v963_v33 = vadd.f32 1.0, %v2060_v19 }
 0x455   : > { %v964_v36 = vadd.f32 1.0, %v2062_v32 }
 0x456   : > { %v967_v39 = vmul.f32 %v963_v33, %v935_v35  ;;  %v2064_v43 = vpop.eup %2063 }
 0x457   : > { %v968_v46 = vmul.f32 %v964_v36, %v936_v42  ;;  %v965_v51 = vadd.f32 1.0, %v2064_v43 }
 0x459   : > { %v969_v56 = vmul.f32 %v965_v51, %v937_v52 }
 0x45d   : > { %v2066_v49 = vpop.eup %2065 }
 0x45e   : > { %v966_v54 = vadd.f32 1.0, %v2066_v49 }
 0x460   : > { %v970_v62 = vmul.f32 %v966_v54, %v938_v59 }
 0x51b   : > { %v1252_v37 = vpop.f32.mrb[4].mxu1 }
 0x51c   : > { %v1253_v40 = vadd.f32 %v1252_v37, %v1202_v34  ;;  %v1854_v41 = vpop.f32.mrb[5].mxu1 }
 0x51d   : > { %v1255_v44 = vpop.f32.mrb[6].mxu1 }
 0x51e   : > { %v1300_v45 = vmul.f32 %v1253_v40, %v967_v39  ;;  %v1256_v47 = vadd.f32 %v1255_v44, %v1207_v38  ;;  %v1855_v48 = vpop.f32.mrb[7].mxu1 }
 0x520   : > { %v1301_v50 = vmul.f32 %v1256_v47, %v968_v46 }
 0x522   : > { %v1304_v53 = vpack.c.bf16 %v1301_v50, %v1300_v45 }
 0x523   : > { %v1293_v55 = vpop.f32.mrb[8].mxu1 }
 0x524   : > { %v1294_v57 = vadd.f32 %v1293_v55, %v1202_v34  ;;  %v1860_v58 = vpop.f32.mrb[9].mxu1  ;;  %1878 = vmatprep.mubr.bf16.mxu0 %v1304_v53 }
 0x525   : > { %v1296_v60 = vpop.f32.mrb[10].mxu1 }
 0x526   : > { %v1302_v61 = vmul.f32 %v1294_v57, %v969_v56  ;;  %v1297_v63 = vadd.f32 %v1296_v60, %v1207_v38  ;;  %v1861_v0 = vpop.f32.mrb[11].mxu1 }
 0x528   : > { %v1303_v1 = vmul.f32 %v1297_v63, %v970_v62 }
 0x52a   : > { %v1305_v2 = vpack.c.bf16 %v1303_v1, %v1302_v61 }
 0x52c   : > { %1879 = vmatmul.mubr.bf16.vlgmr.msra.gmra.mrb[4].mxu0 %v1305_v2 }
 0x5ff   : > { %v1880_v8 = vpop.f32.mrb[4].mxu0 }
 0x600   : > { %v1420_v9 = vadd.f32 %v1880_v8, %v1751_v3  ;;  %v1411_v10 = vpop.f32.mrb[5].mxu0 }
 0x601   : > { %v1412_v11 = vadd.f32 %v1751_v3, %v1411_v10  ;;  %v1881_v12 = vpop.f32.mrb[6].mxu0  ;;  %1437 = sbr.rel (%p1760_p6) target bundleno = 1552 (0x610), region = 96 }
 0x602   : > { %v1428_v14 = vadd.f32 %v1420_v9, %v2800_v5  ;;  %v1423_v15 = vadd.f32 %v1881_v12, %v1751_v3  ;;  %v1414_v17 = vpop.f32.mrb[7].mxu0 }
 0x603   : > { %v1426_v18 = vadd.f32 %v1412_v11, %v2798_v4  ;;  %v1415_v20 = vadd.f32 %v1751_v3, %v1414_v17 }
 0x604   : > { %1432 = vst [vmem:[#allocation2 + $0x10] sm:$0xff] %v1428_v14  ;;  %v1429_v21 = vadd.f32 %v1423_v15, %v2806_v7 }
 0x605   : > { %1430 = vst [vmem:[#allocation2] sm:$0xff] %v1426_v18  ;;  %v1427_v22 = vadd.f32 %v1415_v20, %v2802_v6 }
 0x606   : > { %1433 = vst [vmem:[#allocation2 + $0x18] sm:$0xff] %v1429_v21 }
 0x607   : > { %1431 = vst [vmem:[#allocation2 + $0x8] sm:$0xff] %v1427_v22 }
 0x60b   : > { %v1440_v25 = vld [vmem:[#allocation2 + $0x10] sm:$0xff] }
 0x60c   : > { %v1438_v24 = vld [vmem:[#allocation2] sm:$0xff]  ;;  %1444 = vst [vmem:[%s2791_s12 + $0x10] sm:$0xff] %v1440_v25 }
 0x60d   : > { %1442 = vst [vmem:[%s2791_s12] sm:$0xff] %v1438_v24  ;;  %v1441_v4 = vld [vmem:[#allocation2 + $0x18] sm:$0xff] }
 0x60e   : > { %v1439_v5 = vld [vmem:[#allocation2 + $0x8] sm:$0xff]  ;;  %1445 = vst [vmem:[%s2791_s12 + $0x18] sm:$0xff] %v1441_v4 }
 0x60f   : > { %1443 = vst [vmem:[%s2791_s12 + $0x8] sm:$0xff] %v1439_v5 }
 0x610 PF: > { %s3112_s11 = sld [smem:[#allocation22_spill]]  ;;  %s3113_s27 = sld [smem:[#allocation44_spill]] }
 0x611   : > { %s1461_s14 = sshll.u32 %s2791_s12, 4  ;;  %s1447_s24 = scalar_lea.sflag [#allocation5], %s2717_s9  ;;  %s2930_s14 = int_to_ptr.vmem [resolvable:$true] %s1461_s14 }
 0x612   : > { %s2187_s23 = scalar_lea.vmem %s2930_s14, 512  ;;  %p3115_p7 = scmp.ne.s32.totalorder %s3073_s13, 0 }
 0x613   : > { %p2188_p2 = scmp.ne.s32.totalorder %s2930_s14, %s2187_s23  ;;  %s2330_s1 = smov [#allocation11]  }
 0x614   : > { %s2191_s7 = sshll.u32 %s2330_s1, 4  ;;  %s2192_s7 = int_to_ptr.vmem [resolvable:$false] %s2191_s7 }
 0x615   : > { %p2189_p3 = pnand %p2188_p2, %p3115_p7  ;;  %s2193_s0 = scalar_lea.vmem %s2192_s7, 1024 }
 0x616   : > { %s1775_s30 = sshll.u32 %s3112_s11, 9  ;;  %s3114_s21 = smov %s3113_s27 }
 0x617   : > { %s2927_s28 = scalar_lea.hbm %s3113_s27, %s1775_s30  ;;  %p2190_p0 = pneg %p2189_p3 }
 0x618   : > { %p2194_p10 = scmp.lt.s32.totalorder %s2930_s14, %s2192_s7  ;;  %p2195_p13 = scmp.lt.s32.totalorder %s2193_s0, %s2187_s23 }
 0x61a   : > { %p2196_p11 = por %p2195_p13, %p2194_p10 }
 0x61c   : > { %p2197_p4 = pnand %p2196_p11, %p2190_p0 }
 0x61e   : > { %2200 = shalt.err (!%p2197_p4)
}
 0x61f   : > { %s2201_s12 = scalar_lea.hbm %s2927_s28, 512  ;;  %s2205_s8 = scalar_lea.hbm %s3114_s21, 1024 }
 0x620   : > { %p2202_p9 = scmp.ne.s32.totalorder %s2927_s28, %s2201_s12  ;;  %p2206_p1 = scmp.lt.u32.totalorder %s2927_s28, %s3114_s21 }
 0x621   : > { %p2207_p8 = scmp.lt.u32.totalorder %s2205_s8, %s2201_s12  ;;  %p2209_p2 = scmp.lt.u32.totalorder %s2201_s12, %s2927_s28 }
 0x622   : > { %p2203_p5 = pnand %p2202_p9, %p3115_p7 }
 0x623   : > { %p2208_p6 = por %p2207_p8, %p2206_p1 }
 0x624   : > { %p2204_p12 = pneg %p2203_p5 }
 0x625   : > { %p2210_p3 = por %p2209_p2, %p2208_p6 }
 0x627   : > { %p2211_p0 = pnand %p2210_p3, %p2204_p12 }
 0x629   : > { %2214 = shalt.err (!%p2211_p0)
}
 0x62a   : > { %s2331_s5 = smov 128   ;;  %s2332_s29 = smov 8  }
 0x62b   : > { %1890 = dma.vmem_to_hbm [thread:$0]  (%p3115_p7), %s2930_s14, 512, %s2927_s28, %s1447_s24, %s2331_s5, %s2331_s5, %s2332_s29  }
 0x62c PF: > { %s3116_s25 = sld [smem:[#allocation18_spill]]  ;;  %s3117_s22 = sld [smem:[#allocation30_spill]] }
 0x62d   : > { %p1910_p10 = scmp.ge.s32.totalorder %s2317_s18, 2 }
 0x632   : > { %s1476_s3 = sand.u32 1, %s3116_s25   ;;  %p3118_p13 = scmp.ne.s32.totalorder %s3117_s22, 0 }
 0x633   : > { %s1477_s20 = scalar_lea.sflag [#allocation5], %s1476_s3 }
 0x634   : > { %p1906_p11 = pnand %p1910_p10, %p3118_p13 }
 0x636   : > { %2272 = dma.done.wait (!%p1906_p11), %s1477_s20, 512  }
 0x637   : > { %2274 = vsyncadd (!%p1906_p11), %s1477_s20, 4294966784  ;;  %s35_s18 = sadd.s32 1, %s2317_s18   ;;  %s3119_s25 = sld [smem:[#allocation16_spill]] }
 0x638   : > { %p32_p4 = scmp.ge.s32.totalorder %s35_s18, 6   ;;  %s3120_s26 = sld [smem:[#allocation17_spill]] }
 0x639   : > { %s3121_s27 = sld [smem:[#allocation26_spill]]  ;;  %s3122_s28 = sld [smem:[#allocation19_spill]] }
 0x63a   : > { %s3123_s29 = sld [smem:[#allocation20_spill]]  ;;  %s3124_s30 = sld [smem:[#allocation29_spill]] }
 0x63b   : > { %s3125_s14 = sld [smem:[#allocation23_spill]]  ;;  %s3126_s15 = sld [smem:[#allocation24_spill]] }
 0x63c   : > { %s3127_s16 = sld [smem:[#allocation25_spill]]  ;;  %s3128_s17 = sld [smem:[#allocation27_spill]] }
 0x63d   :  { %34 = sbr.rel (!%p32_p4) target bundleno = 28 (0x1c), region = 189 }
 0x644   :  { %1482 = vsyncpa [#allocation4], 1 }
 0x645   :  { %1484 = vsyncpa [#allocation4 + $0x1], 1 }
 0x646   :  { %1485 = vsyncpa [#allocation7], 1 }
 0x647   :  { %1487 = vsyncpa [#allocation7 + $0x1], 1 }
 0x648   :  { %1488 = vsyncpa [#allocation10], 1 }
 0x649   :  { %1490 = vsyncpa [#allocation10 + $0x1], 1 }
 0x64a   :  { %1491 = vsyncpa [#allocation5], 1 }
 0x64b   :  { %1493 = vsyncpa [#allocation5 + $0x1], 1 }

</bundles_post_ra>
